<compile_context>
chip_gen: v6e
topology: v6e:2x2x1
jax: 0.10.0
libtpu: 0.0.40
codegen_flags: <defaults>
</compile_context>

<pallas_src>
import numpy as np
import jax
import jax.numpy as jnp
from jax import lax
from jax.experimental import pallas as pl
from jax.experimental.pallas import tpu as pltpu

# Model config (dataset == 'mnist'):
C_IN, C_OUT, K = 1, 64, 3
H = W = 28
HO = WO = H - K + 1          # 26  (conv output spatial)
HP = WP = HO // 2            # 13  (pooled spatial)
FLAT = C_OUT * HP * WP       # 10816 = num_flat_features
LANES = WO * C_OUT           # 1664 = conv-output lane width (w-major, channel-minor), 13*128
KDIM = K * W + 1             # 85   = fused contraction dim (3 shifted rows + bias column)
BT = 8                       # images per grid step (BT*13 % 8 == 0; M = 2*BT*13 = 208)


def convnet_kernel(lhs_ref, wband_ref, o_ref):
    # lhs_ref:   (2*BT*13, 85)  bf16  rows [0,104): even conv rows, [104,208): odd conv rows
    # wband_ref: (85, 1664)     bf16  fused conv band + bias row (grid-invariant, fetched once)
    # o_ref:     (BT*13, 1664)  f32   relu(conv+bias), max over the 2x2 pool's row pair
    acc = jnp.dot(lhs_ref[...], wband_ref[...], preferred_element_type=jnp.float32)
    acc = jnp.maximum(acc, 0.0)                         # bias already folded into the matmul
    half = o_ref.shape[0]                               # BT*13
    o_ref[...] = jnp.maximum(acc[:half, :], acc[half:, :])   # row-direction 2x2-pool max


def make_banded_weights(w_oihw, bias):
    """(85, 1664) bf16 slab: band[dy*28 + ow + dx, ow*64 + co] = w[co,0,dy,dx];
    band[84, ow*64 + co] = bias[co] (matched by the LHS ones column)."""
    w = np.asarray(w_oihw, np.float32)                  # (64, 1, 3, 3)
    b = np.asarray(bias, np.float32)                    # (64,)
    band = np.zeros((KDIM, LANES), np.float32)
    for dy in range(K):
        for dx in range(K):
            for ow in range(WO):
                band[dy * W + ow + dx, ow * C_OUT:(ow + 1) * C_OUT] = w[:, 0, dy, dx]
    band[K * W, :] = np.tile(b, WO)
    return jnp.asarray(band, dtype=jnp.bfloat16)


@jax.jit
def _forward_impl(x, wband):
    """x: (H*W*C_IN, B) f32 (batch on dim 1, as in the PyTorch module); wband: (85, 1664) bf16."""
    B = x.shape[1]
    # torch: x.contiguous().view(batch, 1, 28, 28) -> row-major reinterpretation
    x_imgs = jnp.reshape(x, (B, C_IN, H, W)).astype(jnp.float32)[:, 0]      # (B, 28, 28)

    Bp = ((B + BT - 1) // BT) * BT                      # pad batch to a multiple of BT
    if Bp != B:
        x_imgs = jnp.pad(x_imgs, ((0, Bp - B), (0, 0), (0, 0)))
    G = Bp // BT                                        # grid length (keep even for v7x megacore)

    # Fused-K LHS: row oh of image b = [x[b,oh,:], x[b,oh+1,:], x[b,oh+2,:], 1.0]
    lhs = jnp.concatenate(
        [x_imgs[:, 0:HO, :], x_imgs[:, 1:HO + 1, :], x_imgs[:, 2:HO + 2, :],
         jnp.ones((Bp, HO, 1), jnp.float32)], axis=-1)                       # (Bp, 26, 85)
    lhs_even = jnp.reshape(lhs[:, 0::2, :], (G, BT * HP, KDIM))              # conv rows 0,2,...,24
    lhs_odd = jnp.reshape(lhs[:, 1::2, :], (G, BT * HP, KDIM))               # conv rows 1,3,...,25
    lhs_packed = jnp.reshape(jnp.concatenate([lhs_even, lhs_odd], axis=1),
                             (G * 2 * BT * HP, KDIM)).astype(jnp.bfloat16)   # (G*208, 85)

    out = pl.pallas_call(
        convnet_kernel,
        out_shape=jax.ShapeDtypeStruct((Bp * HP, LANES), jnp.float32),
        grid_spec=pltpu.PrefetchScalarGridSpec(
            num_scalar_prefetch=0,
            grid=(G,),
            in_specs=[
                pl.BlockSpec((2 * BT * HP, KDIM), lambda g: (g, 0)),
                # grid-invariant weight slab: same block index every step -> fetched once
                pl.BlockSpec((KDIM, LANES), lambda g: (0, 0)),
            ],
            out_specs=pl.BlockSpec((BT * HP, LANES), lambda g: (g, 0)),
        ),
        compiler_params=pltpu.CompilerParams(dimension_semantics=("parallel",)),
    )(lhs_packed, wband)

    # out[b*13 + ph, ow*64 + co] = relu(conv+bias) row-pooled. Finish the W-direction pool,
    # transpose to NCHW and apply the torch-style raw .view(num_flat_features, batch).
    hp = jnp.reshape(out, (Bp, HP, WO, C_OUT))[:B]                           # (B, 13, 26, 64)
    pooled = jnp.maximum(hp[:, :, 0::2, :], hp[:, :, 1::2, :])               # (B, 13, 13, 64) NHWC
    nchw = jnp.transpose(pooled, (0, 3, 1, 2))                               # (B, 64, 13, 13)
    return jnp.reshape(nchw, (FLAT, B))                                      # raw reinterpretation


def convnet_forward(x, w_oihw, bias):
    wband = make_banded_weights(w_oihw, bias)           # host-side precompute (numpy loops)
    return _forward_impl(x, wband)


def reference_forward(x, w_oihw, bias):
    B = x.shape[1]
    xi = jnp.reshape(x, (B, C_IN, H, W)).astype(jnp.float32)
    conv = lax.conv_general_dilated(
        xi, jnp.asarray(w_oihw, jnp.float32), window_strides=(1, 1), padding='VALID',
        dimension_numbers=('NCHW', 'OIHW', 'NCHW'))
    conv = jnp.maximum(conv + jnp.asarray(bias, jnp.float32)[None, :, None, None], 0.0)
    pooled = lax.reduce_window(conv, -jnp.inf, lax.max, (1, 1, 2, 2), (1, 1, 2, 2), 'VALID')
    return jnp.reshape(pooled, (FLAT, B))


if __name__ == "__main__":
    key = jax.random.PRNGKey(0)
    kx, kw, kb = jax.random.split(key, 3)

    B = 2
    # module expects batch on dim 1; numel must equal B*1*28*28
    x = jax.random.normal(kx, (H * W * C_IN, B), jnp.float32)
    # deterministic synthetic parameters (torch Conv2d(1, 64, 3) shapes)
    w_oihw = jax.random.normal(kw, (C_OUT, C_IN, K, K), jnp.float32) * 0.1
    bias = jax.random.normal(kb, (C_OUT,), jnp.float32) * 0.1

    y = convnet_forward(x, w_oihw, bias)
    y = jax.block_until_ready(y)

    y_ref = reference_forward(x, w_oihw, bias)
    assert y.shape == (FLAT, B)
    # bf16 inputs / f32 accumulation -> relaxed tolerance vs. the f32 reference
    np.testing.assert_allclose(np.asarray(y), np.asarray(y_ref), atol=2e-2, rtol=2e-2)
    print("KERNEL_OK")
</pallas_src>

<mosaic_0001>
module attributes {stable_mosaic.version = 11 : i64} {
  func.func @convnet_kernel(%arg0: i32, %arg1: memref<208x85xbf16, #tpu.memory_space<vmem>>, %arg2: memref<85x1664xbf16, #tpu.memory_space<vmem>>, %arg3: memref<104x1664xf32, #tpu.memory_space<vmem>>) attributes {dimension_semantics = [#tpu.dimension_semantics<parallel>], iteration_bounds = array<i64: 1>, scalar_prefetch = 0 : i64, scratch_operands = 0 : i64, tpu.core_type = #tpu.core_type<tc>, window_params = [{transform_indices = @transform_0, window_bounds = array<i64: 208, 85>}, {pipeline_mode = #tpu.pipeline_mode<synchronous>, transform_indices = @transform_1, window_bounds = array<i64: 85, 1664>}, {transform_indices = @transform_2, window_bounds = array<i64: 104, 1664>}]} {
    %c0 = arith.constant 0 : index
    %c0_0 = arith.constant 0 : index
    %0 = vector.load %arg1[%c0, %c0_0] : memref<208x85xbf16, #tpu.memory_space<vmem>>, vector<208x85xbf16>
    %c0_1 = arith.constant 0 : index
    %c0_2 = arith.constant 0 : index
    %1 = vector.load %arg2[%c0_1, %c0_2] : memref<85x1664xbf16, #tpu.memory_space<vmem>>, vector<85x1664xbf16>
    %cst = arith.constant dense<0.000000e+00> : vector<208x1664xf32>
    %2 = tpu.matmul %0, %1, %cst {dimension_numbers = #tpu.dot_dimension_numbers<[1], [0], [0], [1], [0, 0, 1, 1], [], []>} : vector<208x85xbf16>, vector<85x1664xbf16>, vector<208x1664xf32> -> vector<208x1664xf32>
    %cst_3 = arith.constant 0.000000e+00 : f32
    %3 = vector.broadcast %cst_3 : f32 to vector<208x1664xf32>
    %4 = arith.maximumf %2, %3 : vector<208x1664xf32>
    %5 = vector.extract_strided_slice %4 {offsets = [0, 0], sizes = [104, 1664], strides = [1, 1]} : vector<208x1664xf32> to vector<104x1664xf32>
    %6 = vector.extract_strided_slice %4 {offsets = [104, 0], sizes = [104, 1664], strides = [1, 1]} : vector<208x1664xf32> to vector<104x1664xf32>
    %7 = arith.maximumf %5, %6 : vector<104x1664xf32>
    %c0_4 = arith.constant 0 : index
    %c0_5 = arith.constant 0 : index
    %8 = vector.load %arg3[%c0_4, %c0_5] : memref<104x1664xf32, #tpu.memory_space<vmem>>, vector<104x1664xf32>
    tpu.vector_store %arg3[%c0_4, %c0_5], %7 {strides = array<i32>} : memref<104x1664xf32, #tpu.memory_space<vmem>>, vector<104x1664xf32>,
    return
  }
  func.func @transform_0(%arg0: i32) -> (i32, i32) {
    %c0_i32 = arith.constant 0 : i32
    %c0_i32_0 = arith.constant 0 : i32
    return %arg0, %c0_i32 : i32, i32
  }
  func.func @transform_1(%arg0: i32) -> (i32, i32) {
    %c0_i32 = arith.constant 0 : i32
    %c0_i32_0 = arith.constant 0 : i32
    %c0_i32_1 = arith.constant 0 : i32
    return %c0_i32, %c0_i32_0 : i32, i32
  }
  func.func @transform_2(%arg0: i32) -> (i32, i32) {
    %c0_i32 = arith.constant 0 : i32
    %c0_i32_0 = arith.constant 0 : i32
    return %arg0, %c0_i32 : i32, i32
  }
}

</mosaic_0001>

<bundles_post_ra>
// kernel: _forward_impl.1
= control target key start
LH: loop header
LB: loop body
LE: loop exit
PB: predicated region body
PF: predicated region fallthrough
CT: control target
= control target key end

     0   :  { %7 = vsyncpa [#allocation3], 0  ;;  %s2870_s9 = smov [#allocation2]   ;;  %s4225_s0 = inlined_call_operand.vmem [shape: bf16[208,85], index: 0, kind: input, shape index: {}]   ;;  %s4226_s1 = inlined_call_operand.hbm [shape: bf16[85,1664], index: 1, kind: input, shape index: {}]   ;;  %s4227_s2 = inlined_call_operand.vmem [shape: f32[104,1664], index: 2, kind: output, shape index: {}]  }
   0x1   :  { %s15_s10 = sshll.u32 %s2870_s9, 4  ;;  %s16_s10 = int_to_ptr.vmem [resolvable:$true] %s15_s10 }
   0x2   :  { %s2856_s11 = scalar_lea.vmem %s16_s10, 9152  ;;  %p2861_p1 = scmp.lt.s32.totalorder %s16_s10, %s16_s10 }
   0x3   :  { %p2857_p0 = scmp.ne.s32.totalorder %s16_s10, %s2856_s11  ;;  %p2862_p2 = scmp.lt.s32.totalorder %s2856_s11, %s2856_s11 }
   0x5   :  { %p2863_p3 = por %p2862_p2, %p2861_p1 }
   0x7   :  { %p2864_p4 = pnand %p2863_p3, %p2857_p0 }
   0x9   :  { %2867 = shalt.err (!%p2864_p4)
}
   0xa   :  { %s2871_s12 = smov 832   ;;  %s2872_s13 = smov 52  }
   0xb   :  { %21 = dma.hbm_to_vmem [thread:$0]  %s4226_s1, 9152, %s16_s10, [#allocation3], %s2871_s12, %s2871_s12, %s2872_s13  }
   0xc   :  { %2868 = dma.done.wait [#allocation3], 9152  }
   0xd   :  { %2869 = vsyncadd [#allocation3], 4294958144  ;;  %vm597_vm0 = vcmask 1041408   ;;  %v4230_v0 = vmov 0   ;;  %vm598_vm1 = vcmask 1042432   ;;  %v2874_v1 = vmov 65535  }
   0xe   :  { %672 = vmatprep.mubr.bf16.mxu0 %v4230_v0  ;;  %742 = vmatprep.mubr.bf16.mxu1 %v4230_v0  ;;  %v599_v2 = vsel %vm597_vm0, 4294967295, %v2874_v1  ;;  %v122_v3 = vld [vmem:[#allocation2 + $0x208] sm:$0x77]  ;;  %v2722_v9 = vld [vmem:[#allocation2 + $0x1a4] ss:$52 sps:$4 sm:$0xff]   ;;  %vm557_vm2 = vcmask 695296  }
   0xf   :  { %v2897_v4 = vsel %vm598_vm1, %v599_v2, 0  ;;  %v2515_v5 = vcombine.high %v122_v3, %v122_v3  ;;  %v2514_v6 = vcombine.low %v122_v3, %v122_v3  ;;  %v2724_v10 = vld [vmem:[#allocation2 + $0x1a0] ss:$52 sps:$4 sm:$0xff]   ;;  %v2725_v11 = vld [vmem:[#allocation2 + $0x13c] ss:$52 sps:$4 sm:$0xff]   ;;  %v2924_v36 = vld [vmem:[%s4225_s0 + $0x8] sm:$0xff]  }
  0x10   :  { %v2727_v12 = vld [vmem:[#allocation2 + $0x138] ss:$52 sps:$4 sm:$0xff]   ;;  %v2728_v13 = vld [vmem:[#allocation2 + $0xd4] ss:$52 sps:$4 sm:$0xff]   ;;  %v2730_v14 = vld [vmem:[#allocation2 + $0xd0] ss:$52 sps:$4 sm:$0xff]  }
  0x11   :  { %v605_v7 = vand.u32 %v2515_v5, %v2897_v4  ;;  %v602_v8 = vand.u32 %v2514_v6, %v2897_v4  ;;  %v2731_v15 = vld [vmem:[#allocation2 + $0x6c] ss:$52 sps:$4 sm:$0xff]   ;;  %v124_v16 = vld [vmem:[#allocation2 + $0x218] sm:$0x77]  ;;  %v123_v17 = vld [vmem:[#allocation2 + $0x210] sm:$0x77] }
  0x12   :  { %v2733_v18 = vld [vmem:[#allocation2 + $0x68] ss:$52 sps:$4 sm:$0xff]   ;;  %v2734_v19 = vld [vmem:[#allocation2 + $0x4] ss:$52 sps:$4 sm:$0xff]   ;;  %v2519_v20 = vcombine.high %v124_v16, %v124_v16  ;;  %v2517_v21 = vcombine.high %v123_v17, %v123_v17  ;;  %v2736_v22 = vld [vmem:[#allocation2] ss:$52 sps:$4 sm:$0xff]   ;;  %v2518_v23 = vcombine.low %v124_v16, %v124_v16  ;;  %v2516_v25 = vcombine.low %v123_v17, %v123_v17 }
  0x13   :  { %644 = vmatprep.subr.bf16.mxu0 %v605_v7  ;;  %2701 = vmatprep.subr.bf16.mxu1 %v605_v7  ;;  %v2906_v27 = vld [vmem:[%s4225_s0] sm:$0xff]   ;;  %v2911_v28 = vld [vmem:[%s4225_s0 + $0x38] sm:$0xff]   ;;  %v2747_v31 = vld [vmem:[#allocation2 + $0x1b4] ss:$52 sps:$4 sm:$0xff]   ;;  %vm2876_vm3 = vmmov 0  }
  0x14   :  { %645 = vmatpush1.bf16.msra.mxu0 %v602_v8  ;;  %2707 = vmatpush1.bf16.msra.mxu1 %v602_v8  ;;  %v617_v24 = vand.u32 %v2519_v20, %v2897_v4  ;;  %v611_v26 = vand.u32 %v2517_v21, %v2897_v4  ;;  %v614_v29 = vand.u32 %v2518_v23, %v2897_v4  ;;  %v2750_v32 = vld [vmem:[#allocation2 + $0x1ac] ss:$52 sps:$4 sm:$0xff]   ;;  %v2745_v33 = vld [vmem:[#allocation2 + $0x1b0] ss:$52 sps:$4 sm:$0xff]   ;;  %v2748_v34 = vld [vmem:[#allocation2 + $0x1a8] ss:$52 sps:$4 sm:$0xff]  }
  0x15   :  { %646 = vmatprep.subr.bf16.mxu0 %v2722_v9  ;;  %2702 = vmatprep.subr.bf16.mxu1 %v2722_v9  ;;  %v608_v30 = vand.u32 %v2516_v25, %v2897_v4  ;;  %v2755_v35 = vld [vmem:[#allocation2 + $0x14c] ss:$52 sps:$4 sm:$0xff]   ;;  %v2758_v37 = vld [vmem:[#allocation2 + $0x144] ss:$52 sps:$4 sm:$0xff]   ;;  %v2753_v39 = vld [vmem:[#allocation2 + $0x148] ss:$52 sps:$4 sm:$0xff]  }
  0x16   :  { %v2929_v38 = vld [vmem:[%s4225_s0 + $0x40] sm:$0xff]   ;;  %v2766_v42 = vld [vmem:[#allocation2 + $0xdc] ss:$52 sps:$4 sm:$0xff]   ;;  %v2764_v44 = vld [vmem:[#allocation2 + $0xd8] ss:$52 sps:$4 sm:$0xff]  }
  0x17   :  { %v2756_v40 = vld [vmem:[#allocation2 + $0x140] ss:$52 sps:$4 sm:$0xff]   ;;  %v2763_v41 = vld [vmem:[#allocation2 + $0xe4] ss:$52 sps:$4 sm:$0xff]   ;;  %v2945_v46 = vld [vmem:[%s4225_s0 + $0x48] sm:$0xff]  }
  0x18   :  { %647 = vmatpush1.bf16.msra.mxu0 %v2724_v10  ;;  %2708 = vmatpush1.bf16.msra.mxu1 %v2724_v10  ;;  %v2761_v43 = vld [vmem:[#allocation2 + $0xe0] ss:$52 sps:$4 sm:$0xff]   ;;  %v2774_v48 = vld [vmem:[#allocation2 + $0x7c] ss:$52 sps:$4 sm:$0xff]   ;;  %v126_v50 = vld [vmem:[#allocation2 + $0x228] sm:$0x77] }
  0x19   :  { %648 = vmatprep.subr.bf16.mxu0 %v2725_v11  ;;  %2703 = vmatprep.subr.bf16.mxu1 %v2725_v11  ;;  %v2940_v45 = vld [vmem:[%s4225_s0 + $0x10] sm:$0xff]   ;;  %v125_v49 = vld [vmem:[#allocation2 + $0x220] sm:$0x77]  ;;  %v2772_v52 = vld [vmem:[#allocation2 + $0x78] ss:$52 sps:$4 sm:$0xff]   ;;  %v2523_v56 = vcombine.high %v126_v50, %v126_v50 }
  0x1a   :  { %v2771_v47 = vld [vmem:[#allocation2 + $0x74] ss:$52 sps:$4 sm:$0xff]   ;;  %v2769_v51 = vld [vmem:[#allocation2 + $0x70] ss:$52 sps:$4 sm:$0xff]   ;;  %v2779_v53 = vld [vmem:[#allocation2 + $0xc] ss:$52 sps:$4 sm:$0xff]   ;;  %v2521_v55 = vcombine.high %v125_v49, %v125_v49  ;;  %v2520_v8 = vcombine.low %v125_v49, %v125_v49 }
  0x1b   :  { %v2782_v54 = vld [vmem:[#allocation2 + $0x14] ss:$52 sps:$4 sm:$0xff]   ;;  %v2956_v57 = vld [vmem:[%s4225_s0 + $0x18] sm:$0xff]   ;;  %v2780_v60 = vld [vmem:[#allocation2 + $0x10] ss:$52 sps:$4 sm:$0xff]   ;;  %v629_v62 = vand.u32 %v2523_v56, %v2897_v4 }
  0x1c   :  { %649 = vmatpush1.bf16.msra.mxu0 %v2727_v12  ;;  %2709 = vmatpush1.bf16.msra.mxu1 %v2727_v12  ;;  %v2961_v58 = vld [vmem:[%s4225_s0 + $0x50] sm:$0xff]   ;;  %v2777_v59 = vld [vmem:[#allocation2 + $0x8] ss:$52 sps:$4 sm:$0xff]   ;;  %v623_v61 = vand.u32 %v2521_v55, %v2897_v4  ;;  %v2981_v3 = vld [vmem:[%s4225_s0 + $0x20] sm:$0xff]   ;;  %v620_v10 = vand.u32 %v2520_v8, %v2897_v4  ;;  %v2522_v12 = vcombine.low %v126_v50, %v126_v50 }
  0x1d   :  { %650 = vmatprep.subr.bf16.mxu0 %v2728_v13  ;;  %2704 = vmatprep.subr.bf16.mxu1 %v2728_v13  ;;  %v2969_v63 = vld [vmem:[#allocation2 + $0x230] sm:$0x77]  ;;  %v2986_v5 = vld [vmem:[%s4225_s0 + $0x58] sm:$0xff]   ;;  %v2997_v6 = vld [vmem:[%s4225_s0 + $0x28] sm:$0xff]  }
  0x1e   :  { %v2524_v1 = vcombine.low %v2969_v63, %v2969_v63  ;;  %v3002_v7 = vld [vmem:[%s4225_s0 + $0x60] sm:$0xff]   ;;  %v3013_v9 = vld [vmem:[%s4225_s0 + $0x30] sm:$0xff]   ;;  %v2788_v13 = vld [vmem:[#allocation2 + $0x1b8] ss:$52 sps:$4 sm:$0xff]  }
  0x1f   :  { %v2790_v11 = vld [vmem:[#allocation2 + $0x1bc] ss:$52 sps:$4 sm:$0xff]   ;;  %v2793_v16 = vld [vmem:[#allocation2 + $0x1c4] ss:$52 sps:$4 sm:$0xff]   ;;  %v2806_v25 = vld [vmem:[#allocation2 + $0x80] ss:$52 sps:$4 sm:$0xff]  }
  0x20   :  { %651 = vmatpush1.bf16.msra.mxu0 %v2730_v14  ;;  %2710 = vmatpush1.bf16.msra.mxu1 %v2730_v14  ;;  %v2976_v2 = vand.u32 %v2524_v1, %v2897_v4  ;;  %v2796_v14 = vld [vmem:[#allocation2 + $0x154] ss:$52 sps:$4 sm:$0xff]   ;;  %v2794_v17 = vld [vmem:[#allocation2 + $0x150] ss:$52 sps:$4 sm:$0xff]   ;;  %v2836_v55 = vld [vmem:[#allocation2 + $0x98] ss:$52 sps:$4 sm:$0xff]  }
  0x21   :  { %652 = vmatprep.subr.bf16.mxu0 %v2731_v15  ;;  %2705 = vmatprep.subr.bf16.mxu1 %v2731_v15  ;;  %v626_v15 = vand.u32 %v2522_v12, %v2897_v4  ;;  %v2799_v20 = vld [vmem:[#allocation2 + $0x15c] ss:$52 sps:$4 sm:$0xff]   ;;  %v2808_v23 = vld [vmem:[#allocation2 + $0x84] ss:$52 sps:$4 sm:$0xff]  }
  0x22   :  { %v2800_v21 = vld [vmem:[#allocation2 + $0xe8] ss:$52 sps:$4 sm:$0xff]   ;;  %v2824_v49 = vld [vmem:[#allocation2 + $0x1d0] ss:$52 sps:$4 sm:$0xff]  }
  0x23   :  { %v2828_v50 = vld [vmem:[#allocation2 + $0x168] ss:$52 sps:$4 sm:$0xff]   ;;  %v2840_v56 = vld [vmem:[#allocation2 + $0x30] ss:$52 sps:$4 sm:$0xff]  }
  0x24   :  { %653 = vmatpush1.bf16.msra.mxu0 %v2733_v18  ;;  %2711 = vmatpush1.bf16.msra.mxu1 %v2733_v18  ;;  %v2802_v18 = vld [vmem:[#allocation2 + $0xec] ss:$52 sps:$4 sm:$0xff]  }
  0x25   :  { %654 = vmatprep.subr.bf16.mxu0 %v2734_v19  ;;  %2706 = vmatprep.subr.bf16.mxu1 %v2734_v19  ;;  %v2791_v19 = vld [vmem:[#allocation2 + $0x1c0] ss:$52 sps:$4 sm:$0xff]  }
  0x28   :  { %655 = vmatpush1.bf16.msra.mxu0 %v2736_v22  ;;  %2712 = vmatpush1.bf16.msra.mxu1 %v2736_v22  ;;  %v2797_v22 = vld [vmem:[#allocation2 + $0x158] ss:$52 sps:$4 sm:$0xff]  }
  0x29   :  { %970 = vmatprep.subr.bf16.mxu0 %v617_v24  ;;  %807 = vmatprep.subr.bf16.mxu1 %v611_v26  ;;  %v2805_v24 = vld [vmem:[#allocation2 + $0xf4] ss:$52 sps:$4 sm:$0xff]   ;;  %v2814_v26 = vld [vmem:[#allocation2 + $0x1c] ss:$52 sps:$4 sm:$0xff]  }
  0x2b   :  { %2527 = vmatmul.mubr.msk.bf16.vlgmr.msra.gmra.mxu0 %vm557_vm2, %v2906_v27  ;;  %2534 = vmatmul.mubr.msk.bf16.vlgmr.msra.gmra.mxu1 %vm557_vm2, %v2911_v28 }
  0x2c   :  { %971 = vmatpush1.bf16.msra.mxu0 %v614_v29  ;;  %682 = vmatprep.mubr.bf16.mxu0 %v4230_v0  ;;  %v2803_v29 = vld [vmem:[#allocation2 + $0xf0] ss:$52 sps:$4 sm:$0xff]  }
  0x2d   :  { %752 = vmatprep.mubr.bf16.mxu1 %v4230_v0  ;;  %808 = vmatpush1.bf16.msra.mxu1 %v608_v30  ;;  %v2525_v30 = vcombine.high %v2969_v63, %v2969_v63 }
  0x2e   :  { %972 = vmatprep.subr.bf16.mxu0 %v2747_v31  ;;  %809 = vmatprep.subr.bf16.mxu1 %v2750_v32  ;;  %v2811_v31 = vld [vmem:[#allocation2 + $0x8c] ss:$52 sps:$4 sm:$0xff]  }
  0x2f   :  { %v2812_v32 = vld [vmem:[#allocation2 + $0x18] ss:$52 sps:$4 sm:$0xff]  }
  0x30   :  { %973 = vmatpush1.bf16.msra.mxu0 %v2745_v33  ;;  %v2809_v33 = vld [vmem:[#allocation2 + $0x88] ss:$52 sps:$4 sm:$0xff]  }
  0x31   :  { %810 = vmatpush1.bf16.msra.mxu1 %v2748_v34  ;;  %974 = vmatprep.subr.bf16.mxu0 %v2755_v35  ;;  %v635_v34 = vand.u32 %v2525_v30, %v2897_v4  ;;  %v2817_v35 = vld [vmem:[#allocation2 + $0x24] ss:$52 sps:$4 sm:$0xff]  }
  0x32   :  { %811 = vmatprep.subr.bf16.mxu1 %v2758_v37  ;;  %v2815_v37 = vld [vmem:[#allocation2 + $0x20] ss:$52 sps:$4 sm:$0xff]  }
  0x33   :  { %2528 = vmatmul.mubr.msk.bf16.gmra.mxu0 %vm557_vm2, %v2924_v36  ;;  %2535 = vmatmul.mubr.msk.bf16.gmra.mxu1 %vm557_vm2, %v2929_v38 }
  0x34   :  { %692 = vmatprep.mubr.bf16.mxu0 %v4230_v0  ;;  %762 = vmatprep.mubr.bf16.mxu1 %v4230_v0 }
  0x35   :  { %975 = vmatpush1.bf16.msra.mxu0 %v2753_v39  ;;  %812 = vmatpush1.bf16.msra.mxu1 %v2756_v40  ;;  %v4228_v39 = vmov 0.0   ;;  %v2823_v40 = vld [vmem:[#allocation2 + $0x1cc] ss:$52 sps:$4 sm:$0xff]  }
  0x36   :  { %976 = vmatprep.subr.bf16.mxu0 %v2763_v41  ;;  %813 = vmatprep.subr.bf16.mxu1 %v2766_v42  ;;  %v2820_v41 = vld [vmem:[#allocation2 + $0x238] ss:$0 sps:$4 sm:$0x77]   ;;  %v2821_v42 = vld [vmem:[#allocation2 + $0x1c8] ss:$52 sps:$4 sm:$0xff]  }
  0x39   :  { %977 = vmatpush1.bf16.msra.mxu0 %v2761_v43  ;;  %814 = vmatpush1.bf16.msra.mxu1 %v2764_v44  ;;  %v2827_v43 = vld [vmem:[#allocation2 + $0x164] ss:$52 sps:$4 sm:$0xff]   ;;  %v638_v44 = vand.u32 %v2820_v41, %v2897_v4 }
  0x3a   :  { %815 = vmatprep.subr.bf16.mxu1 %v2771_v47  ;;  %978 = vmatprep.subr.bf16.mxu0 %v2774_v48  ;;  %v2825_v47 = vld [vmem:[#allocation2 + $0x160] ss:$52 sps:$4 sm:$0xff]   ;;  %v2831_v48 = vld [vmem:[#allocation2 + $0xfc] ss:$52 sps:$4 sm:$0xff]   ;;  %v2829_v4 = vld [vmem:[#allocation2 + $0xf8] ss:$52 sps:$4 sm:$0xff]  }
  0x3b   :  { %2529 = vmatmul.mubr.msk.bf16.gmra.mxu0 %vm557_vm2, %v2940_v45  ;;  %2536 = vmatmul.mubr.msk.bf16.gmra.mxu1 %vm557_vm2, %v2945_v46 }
  0x3c   :  { %702 = vmatprep.mubr.bf16.mxu0 %v4230_v0  ;;  %772 = vmatprep.mubr.bf16.mxu1 %v4230_v0 }
  0x3d   :  { %816 = vmatpush1.bf16.msra.mxu1 %v2769_v51  ;;  %979 = vmatpush1.bf16.msra.mxu0 %v2772_v52  ;;  %v2835_v51 = vld [vmem:[#allocation2 + $0x94] ss:$52 sps:$4 sm:$0xff]   ;;  %v2833_v52 = vld [vmem:[#allocation2 + $0x90] ss:$52 sps:$4 sm:$0xff]  }
  0x3e   :  { %817 = vmatprep.subr.bf16.mxu1 %v2779_v53  ;;  %980 = vmatprep.subr.bf16.mxu0 %v2782_v54  ;;  %v2832_v53 = vld [vmem:[#allocation2 + $0x100] ss:$52 sps:$4 sm:$0xff]   ;;  %v2837_v54 = vld [vmem:[#allocation2 + $0x28] ss:$52 sps:$4 sm:$0xff]  }
  0x41   :  { %818 = vmatpush1.bf16.msra.mxu1 %v2777_v59  ;;  %981 = vmatpush1.bf16.msra.mxu0 %v2780_v60 }
  0x42   :  { %1133 = vmatprep.subr.bf16.mxu1 %v623_v61  ;;  %1296 = vmatprep.subr.bf16.mxu0 %v629_v62 }
  0x43   :  { %2530 = vmatmul.mubr.msk.bf16.gmra.mxu0 %vm557_vm2, %v2956_v57  ;;  %2537 = vmatmul.mubr.msk.bf16.gmra.mxu1 %vm557_vm2, %v2961_v58 }
  0x44   :  { %712 = vmatprep.mubr.bf16.mxu0 %v4230_v0  ;;  %782 = vmatprep.mubr.bf16.mxu1 %v4230_v0 }
  0x4b   :  { %2531 = vmatmul.mubr.msk.bf16.gmra.mxu0 %vm557_vm2, %v2981_v3  ;;  %2538 = vmatmul.mubr.msk.bf16.gmra.mxu1 %vm557_vm2, %v2986_v5 }
  0x4c   :  { %722 = vmatprep.mubr.bf16.mxu0 %v4230_v0  ;;  %792 = vmatprep.mubr.bf16.mxu1 %v4230_v0 }
  0x53   :  { %2532 = vmatmul.mubr.msk.bf16.gmra.mxu0 %vm557_vm2, %v2997_v6  ;;  %2539 = vmatmul.mubr.msk.bf16.gmra.mxu1 %vm557_vm2, %v3002_v7 }
  0x54   :  { %732 = vmatprep.mubr.bf16.mxu0 %v4230_v0  ;;  %835 = vmatprep.mubr.bf16.mxu1 %v4230_v0 }
  0x5b   :  { %2533 = vmatmul.mubr.msk.bf16.gmra.mxu0 %vm557_vm2, %v3013_v9  ;;  %2540 = vmatmul.mubr.msk.bf16.vlgmr.msra.gmra.mxu1 %vm557_vm2, %v2906_v27 }
  0x5c   :  { %845 = vmatprep.mubr.bf16.mxu1 %v4230_v0  ;;  %998 = vmatprep.mubr.bf16.mxu0 %v4230_v0 }
  0x5d   :  { %1134 = vmatpush1.bf16.msra.mxu1 %v620_v10 }
  0x5e   :  { %1135 = vmatprep.subr.bf16.mxu1 %v2790_v11 }
  0x61   :  { %1136 = vmatpush1.bf16.msra.mxu1 %v2788_v13 }
  0x62   :  { %1137 = vmatprep.subr.bf16.mxu1 %v2796_v14 }
  0x63   :  { %2541 = vmatmul.mubr.msk.bf16.gmra.mxu1 %vm557_vm2, %v2924_v36  ;;  %2553 = vmatmul.mubr.msk.bf16.vlgmr.msra.gmra.mxu0 %vm557_vm2, %v2906_v27 }
  0x64   :  { %1297 = vmatpush1.bf16.msra.mxu0 %v626_v15  ;;  %855 = vmatprep.mubr.bf16.mxu1 %v4230_v0 }
  0x65   :  { %1008 = vmatprep.mubr.bf16.mxu0 %v4230_v0  ;;  %1298 = vmatprep.subr.bf16.mxu0 %v2793_v16 }
  0x66   :  { %1138 = vmatpush1.bf16.msra.mxu1 %v2794_v17 }
  0x67   :  { %1139 = vmatprep.subr.bf16.mxu1 %v2802_v18 }
  0x68   :  { %1299 = vmatpush1.bf16.msra.mxu0 %v2791_v19 }
  0x69   :  { %1300 = vmatprep.subr.bf16.mxu0 %v2799_v20 }
  0x6a   :  { %1140 = vmatpush1.bf16.msra.mxu1 %v2800_v21 }
  0x6b   :  { %2542 = vmatmul.mubr.msk.bf16.gmra.mxu1 %vm557_vm2, %v2940_v45  ;;  %2554 = vmatmul.mubr.msk.bf16.gmra.mxu0 %vm557_vm2, %v2924_v36 }
  0x6c   :  { %865 = vmatprep.mubr.bf16.mxu1 %v4230_v0  ;;  %1018 = vmatprep.mubr.bf16.mxu0 %v4230_v0 }
  0x6d   :  { %1301 = vmatpush1.bf16.msra.mxu0 %v2797_v22  ;;  %1141 = vmatprep.subr.bf16.mxu1 %v2808_v23 }
  0x6e   :  { %1302 = vmatprep.subr.bf16.mxu0 %v2805_v24  ;;  %1142 = vmatpush1.bf16.msra.mxu1 %v2806_v25 }
  0x6f   :  { %1143 = vmatprep.subr.bf16.mxu1 %v2814_v26 }
  0x71   :  { %1303 = vmatpush1.bf16.msra.mxu0 %v2803_v29 }
  0x72   :  { %1304 = vmatprep.subr.bf16.mxu0 %v2811_v31  ;;  %1144 = vmatpush1.bf16.msra.mxu1 %v2812_v32 }
  0x73   :  { %2543 = vmatmul.mubr.msk.bf16.gmra.mxu1 %vm557_vm2, %v2956_v57  ;;  %2555 = vmatmul.mubr.msk.bf16.gmra.mxu0 %vm557_vm2, %v2940_v45 }
  0x74   :  { %875 = vmatprep.mubr.bf16.mxu1 %v4230_v0  ;;  %1028 = vmatprep.mubr.bf16.mxu0 %v4230_v0 }
  0x75   :  { %1305 = vmatpush1.bf16.msra.mxu0 %v2809_v33  ;;  %1459 = vmatprep.subr.bf16.mxu1 %v635_v34 }
  0x76   :  { %1306 = vmatprep.subr.bf16.mxu0 %v2817_v35 }
  0x79   :  { %1307 = vmatpush1.bf16.msra.mxu0 %v2815_v37 }
  0x7a   :  { %2637 = vmatprep.subr.bf16.mxu0 %v4228_v39 }
  0x7b   :  { %2544 = vmatmul.mubr.msk.bf16.gmra.mxu1 %vm557_vm2, %v2981_v3  ;;  %2556 = vmatmul.mubr.msk.bf16.gmra.mxu0 %vm557_vm2, %v2956_v57 }
  0x7c   :  { %885 = vmatprep.mubr.bf16.mxu1 %v4230_v0  ;;  %1038 = vmatprep.mubr.bf16.mxu0 %v4230_v0 }
  0x83   :  { %2545 = vmatmul.mubr.msk.bf16.gmra.mxu1 %vm557_vm2, %v2997_v6  ;;  %2557 = vmatmul.mubr.msk.bf16.gmra.mxu0 %vm557_vm2, %v2981_v3 }
  0x84   :  { %895 = vmatprep.mubr.bf16.mxu1 %v4230_v0  ;;  %1048 = vmatprep.mubr.bf16.mxu0 %v4230_v0 }
  0x8b   :  { %2546 = vmatmul.mubr.msk.bf16.gmra.mxu1 %vm557_vm2, %v3013_v9  ;;  %2558 = vmatmul.mubr.msk.bf16.gmra.mxu0 %vm557_vm2, %v2997_v6 }
  0x8c   :  { %905 = vmatprep.mubr.bf16.mxu1 %v4230_v0  ;;  %1058 = vmatprep.mubr.bf16.mxu0 %v4230_v0 }
  0x93   :  { %2547 = vmatmul.mubr.msk.bf16.gmra.mxu1 %vm557_vm2, %v2911_v28  ;;  %2559 = vmatmul.mubr.msk.bf16.gmra.mxu0 %vm557_vm2, %v3013_v9 }
  0x94   :  { %915 = vmatprep.mubr.bf16.mxu1 %v4230_v0  ;;  %1068 = vmatprep.mubr.bf16.mxu0 %v4230_v0 }
  0x9b   :  { %2548 = vmatmul.mubr.msk.bf16.gmra.mxu1 %vm557_vm2, %v2929_v38  ;;  %2560 = vmatmul.mubr.msk.bf16.gmra.mxu0 %vm557_vm2, %v2911_v28 }
  0x9c   :  { %925 = vmatprep.mubr.bf16.mxu1 %v4230_v0  ;;  %1078 = vmatprep.mubr.bf16.mxu0 %v4230_v0 }
  0xa3   :  { %2549 = vmatmul.mubr.msk.bf16.gmra.mxu1 %vm557_vm2, %v2945_v46  ;;  %2561 = vmatmul.mubr.msk.bf16.gmra.mxu0 %vm557_vm2, %v2929_v38 }
  0xa4   :  { %935 = vmatprep.mubr.bf16.mxu1 %v4230_v0  ;;  %1088 = vmatprep.mubr.bf16.mxu0 %v4230_v0 }
  0xab   :  { %2550 = vmatmul.mubr.msk.bf16.gmra.mxu1 %vm557_vm2, %v2961_v58  ;;  %2562 = vmatmul.mubr.msk.bf16.gmra.mxu0 %vm557_vm2, %v2945_v46 }
  0xac   :  { %945 = vmatprep.mubr.bf16.mxu1 %v4230_v0  ;;  %1098 = vmatprep.mubr.bf16.mxu0 %v4230_v0 }
  0xb3   :  { %2551 = vmatmul.mubr.msk.bf16.gmra.mxu1 %vm557_vm2, %v2986_v5  ;;  %2563 = vmatmul.mubr.msk.bf16.gmra.mxu0 %vm557_vm2, %v2961_v58 }
  0xb4   :  { %955 = vmatprep.mubr.bf16.mxu1 %v4230_v0  ;;  %1108 = vmatprep.mubr.bf16.mxu0 %v4230_v0 }
  0xbb   :  { %2552 = vmatmul.mubr.msk.bf16.gmra.mxu1 %vm557_vm2, %v3002_v7  ;;  %2564 = vmatmul.mubr.msk.bf16.gmra.mxu0 %vm557_vm2, %v2986_v5 }
  0xbc   :  { %1118 = vmatprep.mubr.bf16.mxu0 %v4230_v0  ;;  %1161 = vmatprep.mubr.bf16.mxu1 %v4230_v0 }
  0xc3   :  { %2565 = vmatmul.mubr.msk.bf16.gmra.mxu0 %vm557_vm2, %v3002_v7  ;;  %2566 = vmatmul.mubr.msk.bf16.vlgmr.msra.gmra.mxu1 %vm557_vm2, %v2906_v27 }
  0xc4   :  { %1171 = vmatprep.mubr.bf16.mxu1 %v4230_v0  ;;  %1324 = vmatprep.mubr.bf16.mxu0 %v4230_v0 }
  0xc5   :  { %1460 = vmatpush1.bf16.msra.mxu1 %v2976_v2 }
  0xc6   :  { %1461 = vmatprep.subr.bf16.mxu1 %v2823_v40 }
  0xc9   :  { %1462 = vmatpush1.bf16.msra.mxu1 %v2821_v42 }
  0xca   :  { %1463 = vmatprep.subr.bf16.mxu1 %v2827_v43 }
  0xcb   :  { %2567 = vmatmul.mubr.msk.bf16.gmra.mxu1 %vm557_vm2, %v2924_v36  ;;  %2579 = vmatmul.mubr.msk.bf16.vlgmr.msra.gmra.mxu0 %vm557_vm2, %v2906_v27  ;;  %v2839_v27 = vld [vmem:[#allocation2 + $0x2c] ss:$52 sps:$4 sm:$0xff]  }
  0xcc   :  { %2638 = vmatpush3.bf16.msra.mxu0 %v638_v44  ;;  %1181 = vmatprep.mubr.bf16.mxu1 %v4230_v0 }
  0xcd   :  { %1334 = vmatprep.mubr.bf16.mxu0 %v4230_v0  ;;  %2639 = vmatprep.subr.bf16.mxu0 %v4228_v39 }
  0xce   :  { %1464 = vmatpush1.bf16.msra.mxu1 %v2825_v47 }
  0xcf   :  { %1465 = vmatprep.subr.bf16.mxu1 %v2831_v48 }
  0xd0   :  { %2640 = vmatpush3.bf16.msra.mxu0 %v2824_v49 }
  0xd1   :  { %2641 = vmatprep.subr.bf16.mxu0 %v4228_v39 }
  0xd2   :  { %1466 = vmatpush1.bf16.msra.mxu1 %v2829_v4 }
  0xd3   :  { %2568 = vmatmul.mubr.msk.bf16.gmra.mxu1 %vm557_vm2, %v2940_v45  ;;  %2580 = vmatmul.mubr.msk.bf16.gmra.mxu0 %vm557_vm2, %v2924_v36 }
  0xd4   :  { %1191 = vmatprep.mubr.bf16.mxu1 %v4230_v0  ;;  %1344 = vmatprep.mubr.bf16.mxu0 %v4230_v0 }
  0xd5   :  { %2642 = vmatpush3.bf16.msra.mxu0 %v2828_v50  ;;  %1467 = vmatprep.subr.bf16.mxu1 %v2835_v51 }
  0xd6   :  { %2643 = vmatprep.subr.bf16.mxu0 %v4228_v39  ;;  %1468 = vmatpush1.bf16.msra.mxu1 %v2833_v52 }
  0xd7   :  { %1469 = vmatprep.subr.bf16.mxu1 %v2839_v27 }
  0xd9   :  { %2644 = vmatpush3.bf16.msra.mxu0 %v2832_v53 }
  0xda   :  { %2645 = vmatprep.subr.bf16.mxu0 %v4228_v39  ;;  %1470 = vmatpush1.bf16.msra.mxu1 %v2837_v54 }
  0xdb   :  { %2569 = vmatmul.mubr.msk.bf16.gmra.mxu1 %vm557_vm2, %v2956_v57  ;;  %2581 = vmatmul.mubr.msk.bf16.gmra.mxu0 %vm557_vm2, %v2940_v45 }
  0xdc   :  { %1201 = vmatprep.mubr.bf16.mxu1 %v4230_v0  ;;  %1354 = vmatprep.mubr.bf16.mxu0 %v4230_v0 }
  0xdd   :  { %2646 = vmatpush3.bf16.msra.mxu0 %v2836_v55 }
  0xde   :  { %2647 = vmatprep.subr.bf16.mxu0 %v4228_v39 }
  0xe1   :  { %2648 = vmatpush3.bf16.msra.mxu0 %v2840_v56 }
  0xe3   :  { %2570 = vmatmul.mubr.msk.bf16.gmra.mxu1 %vm557_vm2, %v2981_v3  ;;  %2582 = vmatmul.mubr.msk.bf16.gmra.mxu0 %vm557_vm2, %v2956_v57 }
  0xe4   :  { %1211 = vmatprep.mubr.bf16.mxu1 %v4230_v0  ;;  %1364 = vmatprep.mubr.bf16.mxu0 %v4230_v0 }
  0xeb   :  { %v3136_v59 = vpop.f32.mrf.mxu0  ;;  %v744_v60 = vpop.f32.mrf.mxu1  ;;  %2571 = vmatmul.mubr.msk.bf16.gmra.mxu1 %vm557_vm2, %v2997_v6  ;;  %2583 = vmatmul.mubr.msk.bf16.gmra.mxu0 %vm557_vm2, %v2981_v3 }
  0xec   :  { %1221 = vmatprep.mubr.bf16.mxu1 %v4230_v0  ;;  %1374 = vmatprep.mubr.bf16.mxu0 %v4230_v0  ;;  %v1937_v63 = vmax.f32 %v744_v60, 0.0 }
  0xed   :  { %v3144_v61 = vpop.f32.mrf.mxu0  ;;  %v746_v62 = vpop.f32.mrf.mxu1 }
  0xee   :  { %v1938_v8 = vmax.f32 %v746_v62, 0.0 }
  0xef   :  { %v678_v1 = vpop.f32.mrf.mxu0  ;;  %v748_v2 = vpop.f32.mrf.mxu1 }
  0xf0   :  { %v1768_v10 = vmax.f32 %v678_v1, 0.0  ;;  %v1950_v17 = vmax.f32 %v748_v2, 0.0 }
  0xf1   :  { %v680_v11 = vpop.f32.mrf.mxu0  ;;  %v750_v12 = vpop.f32.mrf.mxu1 }
  0xf2   :  { %v2106_v13 = vmax.f32 %v1768_v10, %v1937_v63  ;;  %v1769_v14 = vmax.f32 %v680_v11, 0.0  ;;  %v1951_v22 = vmax.f32 %v750_v12, 0.0 }
  0xf3   :  { %v684_v15 = vpop.f32.mrf.mxu0  ;;  %v754_v16 = vpop.f32.mrf.mxu1  ;;  %2572 = vmatmul.mubr.msk.bf16.gmra.mxu1 %vm557_vm2, %v3013_v9  ;;  %2584 = vmatmul.mubr.msk.bf16.gmra.mxu0 %vm557_vm2, %v2997_v6 }
  0xf4   :  { %2275 = vst [vmem:[%s4227_s2 + $0x68] sm:$0xff] %v2106_v13  ;;  %v2107_v18 = vmax.f32 %v1769_v14, %v1938_v8  ;;  %v1781_v19 = vmax.f32 %v684_v15, 0.0  ;;  %1231 = vmatprep.mubr.bf16.mxu1 %v4230_v0  ;;  %1384 = vmatprep.mubr.bf16.mxu0 %v4230_v0  ;;  %v1963_v24 = vmax.f32 %v754_v16, 0.0 }
  0xf5   :  { %v686_v20 = vpop.f32.mrf.mxu0  ;;  %v756_v21 = vpop.f32.mrf.mxu1 }
  0xf6   :  { %2276 = vst [vmem:[%s4227_s2 + $0x70] sm:$0xff] %v2107_v18  ;;  %v2119_v23 = vmax.f32 %v1781_v19, %v1950_v17  ;;  %v1782_v25 = vmax.f32 %v686_v20, 0.0  ;;  %v1964_v31 = vmax.f32 %v756_v21, 0.0 }
  0xf7   :  { %v688_v26 = vpop.f32.mrf.mxu0  ;;  %v758_v29 = vpop.f32.mrf.mxu1 }
  0xf8   :  { %2288 = vst [vmem:[%s4227_s2 + $0xd0] sm:$0xff] %v2119_v23  ;;  %v2120_v30 = vmax.f32 %v1782_v25, %v1951_v22  ;;  %v1794_v32 = vmax.f32 %v688_v26, 0.0  ;;  %v1976_v42 = vmax.f32 %v758_v29, 0.0 }
  0xf9   :  { %v690_v33 = vpop.f32.mrf.mxu0  ;;  %v760_v34 = vpop.f32.mrf.mxu1 }
  0xfa   :  { %2289 = vst [vmem:[%s4227_s2 + $0xd8] sm:$0xff] %v2120_v30  ;;  %v2132_v35 = vmax.f32 %v1794_v32, %v1963_v24  ;;  %v1795_v37 = vmax.f32 %v690_v33, 0.0  ;;  %v1977_v49 = vmax.f32 %v760_v34, 0.0 }
  0xfb   :  { %v694_v40 = vpop.f32.mrf.mxu0  ;;  %v764_v41 = vpop.f32.mrf.mxu1  ;;  %2573 = vmatmul.mubr.msk.bf16.gmra.mxu1 %vm557_vm2, %v2911_v28  ;;  %2585 = vmatmul.mubr.msk.bf16.gmra.mxu0 %vm557_vm2, %v3013_v9 }
  0xfc   :  { %2301 = vst [vmem:[%s4227_s2 + $0x138] sm:$0xff] %v2132_v35  ;;  %v2133_v43 = vmax.f32 %v1795_v37, %v1964_v31  ;;  %v1807_v44 = vmax.f32 %v694_v40, 0.0  ;;  %1241 = vmatprep.mubr.bf16.mxu1 %v4230_v0  ;;  %1394 = vmatprep.mubr.bf16.mxu0 %v4230_v0  ;;  %v1989_v50 = vmax.f32 %v764_v41, 0.0 }
  0xfd   :  { %v696_v47 = vpop.f32.mrf.mxu0  ;;  %v766_v48 = vpop.f32.mrf.mxu1 }
  0xfe   :  { %2302 = vst [vmem:[%s4227_s2 + $0x140] sm:$0xff] %v2133_v43  ;;  %v2145_v4 = vmax.f32 %v1807_v44, %v1976_v42  ;;  %v1808_v51 = vmax.f32 %v696_v47, 0.0  ;;  %v1990_v54 = vmax.f32 %v766_v48, 0.0 }
  0xff   :  { %v698_v52 = vpop.f32.mrf.mxu0  ;;  %v768_v27 = vpop.f32.mrf.mxu1 }
 0x100   :  { %2314 = vst [vmem:[%s4227_s2 + $0x1a0] sm:$0xff] %v2145_v4  ;;  %v2146_v53 = vmax.f32 %v1808_v51, %v1977_v49  ;;  %v1820_v55 = vmax.f32 %v698_v52, 0.0  ;;  %v2002_v8 = vmax.f32 %v768_v27, 0.0 }
 0x101   :  { %v700_v56 = vpop.f32.mrf.mxu0  ;;  %v770_v60 = vpop.f32.mrf.mxu1 }
 0x102   :  { %2315 = vst [vmem:[%s4227_s2 + $0x1a8] sm:$0xff] %v2146_v53  ;;  %v2158_v62 = vmax.f32 %v1820_v55, %v1989_v50  ;;  %v1821_v63 = vmax.f32 %v700_v56, 0.0  ;;  %v2003_v14 = vmax.f32 %v770_v60, 0.0 }
 0x103   :  { %v704_v1 = vpop.f32.mrf.mxu0  ;;  %v774_v2 = vpop.f32.mrf.mxu1  ;;  %2574 = vmatmul.mubr.msk.bf16.gmra.mxu1 %vm557_vm2, %v2929_v38  ;;  %2586 = vmatmul.mubr.msk.bf16.gmra.mxu0 %vm557_vm2, %v2911_v28 }
 0x104   :  { %2327 = vst [vmem:[%s4227_s2 + $0x208] sm:$0xff] %v2158_v62  ;;  %v2159_v10 = vmax.f32 %v1821_v63, %v1990_v54  ;;  %v1833_v11 = vmax.f32 %v704_v1, 0.0  ;;  %1251 = vmatprep.mubr.bf16.mxu1 %v4230_v0  ;;  %1404 = vmatprep.mubr.bf16.mxu0 %v4230_v0  ;;  %v2015_v28 = vmax.f32 %v774_v2, 0.0 }
 0x105   :  { %v706_v12 = vpop.f32.mrf.mxu0  ;;  %v776_v13 = vpop.f32.mrf.mxu1 }
 0x106   :  { %2328 = vst [vmem:[%s4227_s2 + $0x210] sm:$0xff] %v2159_v10  ;;  %v2171_v15 = vmax.f32 %v1833_v11, %v2002_v8  ;;  %v1834_v16 = vmax.f32 %v706_v12, 0.0  ;;  %v2016_v20 = vmax.f32 %v776_v13, 0.0 }
 0x107   :  { %v708_v17 = vpop.f32.mrf.mxu0  ;;  %v778_v18 = vpop.f32.mrf.mxu1 }
 0x108   :  { %2340 = vst [vmem:[%s4227_s2 + $0x270] sm:$0xff] %v2171_v15  ;;  %v2172_v19 = vmax.f32 %v1834_v16, %v2003_v14  ;;  %v1846_v21 = vmax.f32 %v708_v17, 0.0  ;;  %v2028_v30 = vmax.f32 %v778_v18, 0.0 }
 0x109   :  { %v710_v22 = vpop.f32.mrf.mxu0  ;;  %v780_v23 = vpop.f32.mrf.mxu1 }
 0x10a   :  { %2341 = vst [vmem:[%s4227_s2 + $0x278] sm:$0xff] %v2172_v19  ;;  %v2184_v24 = vmax.f32 %v1846_v21, %v2015_v28  ;;  %v1847_v25 = vmax.f32 %v710_v22, 0.0  ;;  %v2029_v35 = vmax.f32 %v780_v23, 0.0 }
 0x10b   :  { %v714_v26 = vpop.f32.mrf.mxu0  ;;  %v784_v29 = vpop.f32.mrf.mxu1  ;;  %2575 = vmatmul.mubr.msk.bf16.gmra.mxu1 %vm557_vm2, %v2945_v46  ;;  %2587 = vmatmul.mubr.msk.bf16.gmra.mxu0 %vm557_vm2, %v2929_v38 }
 0x10c   :  { %2353 = vst [vmem:[%s4227_s2 + $0x2d8] sm:$0xff] %v2184_v24  ;;  %v2185_v31 = vmax.f32 %v1847_v25, %v2016_v20  ;;  %v1859_v32 = vmax.f32 %v714_v26, 0.0  ;;  %1261 = vmatprep.mubr.bf16.mxu1 %v4230_v0  ;;  %1414 = vmatprep.mubr.bf16.mxu0 %v4230_v0  ;;  %v2041_v38 = vmax.f32 %v784_v29, 0.0  ;;  %v1755_v26 = vmax.f32 %v3136_v59, 0.0 }
 0x10d   :  { %v716_v33 = vpop.f32.mrf.mxu0  ;;  %v786_v34 = vpop.f32.mrf.mxu1 }
 0x10e   :  { %2354 = vst [vmem:[%s4227_s2 + $0x2e0] sm:$0xff] %v2185_v31  ;;  %v2197_v37 = vmax.f32 %v1859_v32, %v2028_v30  ;;  %v1860_v40 = vmax.f32 %v716_v33, 0.0  ;;  %v2042_v44 = vmax.f32 %v786_v34, 0.0  ;;  %v1756_v33 = vmax.f32 %v3144_v61, 0.0 }
 0x10f   :  { %v718_v41 = vpop.f32.mrf.mxu0  ;;  %v788_v42 = vpop.f32.mrf.mxu1 }
 0x110   :  { %2366 = vst [vmem:[%s4227_s2 + $0x340] sm:$0xff] %v2197_v37  ;;  %v2198_v43 = vmax.f32 %v1860_v40, %v2029_v35  ;;  %v1872_v47 = vmax.f32 %v718_v41, 0.0  ;;  %v2054_v27 = vmax.f32 %v788_v42, 0.0 }
 0x111   :  { %v720_v48 = vpop.f32.mrf.mxu0  ;;  %v790_v49 = vpop.f32.mrf.mxu1 }
 0x112   :  { %2367 = vst [vmem:[%s4227_s2 + $0x348] sm:$0xff] %v2198_v43  ;;  %v2210_v4 = vmax.f32 %v1872_v47, %v2041_v38  ;;  %v1873_v50 = vmax.f32 %v720_v48, 0.0  ;;  %v2055_v60 = vmax.f32 %v790_v49, 0.0  ;;  %v2841_v48 = vld [vmem:[%s4225_s0] sm:$0xff]  }
 0x113   :  { %v724_v51 = vpop.f32.mrf.mxu0  ;;  %v794_v52 = vpop.f32.mrf.mxu1  ;;  %2576 = vmatmul.mubr.msk.bf16.gmra.mxu1 %vm557_vm2, %v2961_v58  ;;  %2588 = vmatmul.mubr.msk.bf16.gmra.mxu0 %vm557_vm2, %v2945_v46 }
 0x114   :  { %2379 = vst [vmem:[%s4227_s2 + $0x3a8] sm:$0xff] %v2210_v4  ;;  %v2211_v53 = vmax.f32 %v1873_v50, %v2042_v44  ;;  %v1885_v54 = vmax.f32 %v724_v51, 0.0  ;;  %1271 = vmatprep.mubr.bf16.mxu1 %v4230_v0  ;;  %1424 = vmatprep.mubr.bf16.mxu0 %v4230_v0  ;;  %v2067_v46 = vmax.f32 %v794_v52, 0.0 }
 0x115   :  { %v726_v55 = vpop.f32.mrf.mxu0  ;;  %v796_v56 = vpop.f32.mrf.mxu1 }
 0x116   :  { %2380 = vst [vmem:[%s4227_s2 + $0x3b0] sm:$0xff] %v2211_v53  ;;  %v2223_v62 = vmax.f32 %v1885_v54, %v2054_v27  ;;  %v1886_v63 = vmax.f32 %v726_v55, 0.0  ;;  %v2068_v10 = vmax.f32 %v796_v56, 0.0 }
 0x117   :  { %v728_v1 = vpop.f32.mrf.mxu0  ;;  %v798_v2 = vpop.f32.mrf.mxu1 }
 0x118   :  { %2392 = vst [vmem:[%s4227_s2 + $0x410] sm:$0xff] %v2223_v62  ;;  %v2224_v8 = vmax.f32 %v1886_v63, %v2055_v60  ;;  %v1898_v11 = vmax.f32 %v728_v1, 0.0  ;;  %v2080_v17 = vmax.f32 %v798_v2, 0.0 }
 0x119   :  { %v730_v12 = vpop.f32.mrf.mxu0  ;;  %v800_v13 = vpop.f32.mrf.mxu1 }
 0x11a   :  { %2393 = vst [vmem:[%s4227_s2 + $0x418] sm:$0xff] %v2224_v8  ;;  %v2236_v14 = vmax.f32 %v1898_v11, %v2067_v46  ;;  %v1899_v15 = vmax.f32 %v730_v12, 0.0  ;;  %v2081_v22 = vmax.f32 %v800_v13, 0.0 }
 0x11b   :  { %v734_v28 = vpop.f32.mrf.mxu0  ;;  %v3236_v16 = vpop.f32.mrf.mxu1  ;;  %2577 = vmatmul.mubr.msk.bf16.gmra.mxu1 %vm557_vm2, %v2986_v5  ;;  %2589 = vmatmul.mubr.msk.bf16.gmra.mxu0 %vm557_vm2, %v2961_v58 }
 0x11c   :  { %2405 = vst [vmem:[%s4227_s2 + $0x478] sm:$0xff] %v2236_v14  ;;  %v2237_v18 = vmax.f32 %v1899_v15, %v2068_v10  ;;  %v1911_v19 = vmax.f32 %v734_v28, 0.0  ;;  %1281 = vmatprep.mubr.bf16.mxu1 %v4230_v0  ;;  %1434 = vmatprep.mubr.bf16.mxu0 %v4230_v0 }
 0x11d   :  { %v736_v20 = vpop.f32.mrf.mxu0  ;;  %v3247_v21 = vpop.f32.mrf.mxu1 }
 0x11e   :  { %2406 = vst [vmem:[%s4227_s2 + $0x480] sm:$0xff] %v2237_v18  ;;  %v2249_v58 = vmax.f32 %v1911_v19, %v2080_v17  ;;  %v1912_v23 = vmax.f32 %v736_v20, 0.0 }
 0x11f   :  { %v738_v24 = vpop.f32.mrf.mxu0  ;;  %v3252_v25 = vpop.f32.mrf.mxu1 }
 0x120   :  { %2418 = vst [vmem:[%s4227_s2 + $0x4e0] sm:$0xff] %v2249_v58  ;;  %v2250_v29 = vmax.f32 %v1912_v23, %v2081_v22  ;;  %v1924_v30 = vmax.f32 %v738_v24, 0.0 }
 0x121   :  { %v740_v31 = vpop.f32.mrf.mxu0  ;;  %v3258_v32 = vpop.f32.mrf.mxu1 }
 0x122   :  { %2419 = vst [vmem:[%s4227_s2 + $0x4e8] sm:$0xff] %v2250_v29  ;;  %v2093_v34 = vmax.f32 %v1755_v26, %v1924_v30  ;;  %v1925_v35 = vmax.f32 %v740_v31, 0.0  ;;  %v1757_v29 = vmax.f32 %v3236_v16, 0.0 }
 0x123   :  { %v3264_v37 = vpop.f32.mrf.mxu1  ;;  %v3266_v59 = vpop.f32.mrf.mxu0  ;;  %2578 = vmatmul.mubr.msk.bf16.gmra.mxu1 %vm557_vm2, %v3002_v7  ;;  %2590 = vmatmul.mubr.msk.bf16.gmra.mxu0 %vm557_vm2, %v2986_v5 }
 0x124   :  { %2262 = vst [vmem:[%s4227_s2] sm:$0xff] %v2093_v34  ;;  %v2094_v61 = vmax.f32 %v1756_v33, %v1925_v35  ;;  %1444 = vmatprep.mubr.bf16.mxu0 %v4230_v0  ;;  %1487 = vmatprep.mubr.bf16.mxu1 %v4230_v0 }
 0x125   :  { %v3277_v38 = vpop.f32.mrf.mxu1  ;;  %v3279_v40 = vpop.f32.mrf.mxu0 }
 0x126   :  { %2263 = vst [vmem:[%s4227_s2 + $0x8] sm:$0xff] %v2094_v61 }
 0x127   :  { %v3284_v41 = vpop.f32.mrf.mxu1  ;;  %v3286_v5 = vpop.f32.mrf.mxu0 }
 0x129   :  { %v3288_v42 = vpop.f32.mrf.mxu1  ;;  %v3290_v43 = vpop.f32.mrf.mxu0 }
 0x12b   :  { %v3292_v44 = vpop.f32.mrf.mxu1  ;;  %v3294_v47 = vpop.f32.mrf.mxu0  ;;  %2591 = vmatmul.mubr.msk.bf16.gmra.mxu0 %vm557_vm2, %v3002_v7  ;;  %2592 = vmatmul.mubr.msk.bf16.vlgmr.msra.gmra.mxu1 %vm557_vm2, %v2841_v48 }
 0x12c   :  { %1497 = vmatprep.mubr.bf16.mxu1 %v4230_v0  ;;  %2649 = vmatprep.mubr.msk.bf16.mxu0 %vm2876_vm3, %v4228_v39 }
 0x12d   :  { %v3305_v49 = vpop.f32.mrf.mxu1  ;;  %v3307_v4 = vpop.f32.mrf.mxu0 }
 0x12f   :  { %v3309_v50 = vpop.f32.mrf.mxu1  ;;  %v3311_v51 = vpop.f32.mrf.mxu0 }
 0x131   :  { %v3313_v7 = vpop.f32.mrf.mxu1  ;;  %v3315_v52 = vpop.f32.mrf.mxu0 }
 0x133   :  { %v3317_v27 = vpop.f32.mrf.mxu1  ;;  %v3319_v53 = vpop.f32.mrf.mxu0  ;;  %2593 = vmatmul.mubr.msk.bf16.gmra.mxu1 %vm557_vm2, %v2924_v36  ;;  %2650 = vmatmul.mubr.msk.bf16.vlgmr.msra.gmra.mxu0 %vm557_vm2, %v2841_v48 }
 0x134   :  { %1507 = vmatprep.mubr.bf16.mxu1 %v4230_v0  ;;  %2653 = vmatprep.mubr.msk.bf16.mxu0 %vm2876_vm3, %v4228_v39 }
 0x135   :  { %v3327_v54 = vpop.f32.mrf.mxu1  ;;  %v3329_v55 = vpop.f32.mrf.mxu0 }
 0x137   :  { %v3331_v56 = vpop.f32.mrf.mxu1  ;;  %v3333_v60 = vpop.f32.mrf.mxu0 }
 0x139   :  { %v3335_v62 = vpop.f32.mrf.mxu1  ;;  %v3337_v46 = vpop.f32.mrf.mxu0 }
 0x13b   :  { %v3339_v63 = vpop.f32.mrf.mxu1  ;;  %v3341_v1 = vpop.f32.mrf.mxu0  ;;  %2594 = vmatmul.mubr.msk.bf16.gmra.mxu1 %vm557_vm2, %v2940_v45  ;;  %2654 = vmatmul.mubr.msk.bf16.gmra.mxu0 %vm557_vm2, %v2924_v36 }
 0x13c   :  { %1517 = vmatprep.mubr.bf16.mxu1 %v4230_v0  ;;  %2657 = vmatprep.mubr.msk.bf16.mxu0 %vm2876_vm3, %v4228_v39 }
 0x13d   :  { %v3350_v2 = vpop.f32.mrf.mxu1  ;;  %v3352_v8 = vpop.f32.mrf.mxu0 }
 0x13f   :  { %v3354_v10 = vpop.f32.mrf.mxu1  ;;  %v3356_v11 = vpop.f32.mrf.mxu0 }
 0x141   :  { %v3358_v12 = vpop.f32.mrf.mxu1  ;;  %v3360_v13 = vpop.f32.mrf.mxu0 }
 0x143   :  { %v3362_v14 = vpop.f32.mrf.mxu1  ;;  %v3364_v36 = vpop.f32.mrf.mxu0  ;;  %2595 = vmatmul.mubr.msk.bf16.gmra.mxu1 %vm557_vm2, %v2956_v57  ;;  %2658 = vmatmul.mubr.msk.bf16.gmra.mxu0 %vm557_vm2, %v2940_v45 }
 0x144   :  { %1527 = vmatprep.mubr.bf16.mxu1 %v4230_v0  ;;  %2661 = vmatprep.mubr.msk.bf16.mxu0 %vm2876_vm3, %v4228_v39 }
 0x145   :  { %v3373_v15 = vpop.f32.mrf.mxu1  ;;  %v3375_v28 = vpop.f32.mrf.mxu0 }
 0x147   :  { %v3377_v17 = vpop.f32.mrf.mxu1  ;;  %v3379_v18 = vpop.f32.mrf.mxu0 }
 0x149   :  { %v3381_v19 = vpop.f32.mrf.mxu1  ;;  %v3383_v20 = vpop.f32.mrf.mxu0 }
 0x14b   :  { %v3385_v22 = vpop.f32.mrf.mxu1  ;;  %v3387_v45 = vpop.f32.mrf.mxu0  ;;  %2596 = vmatmul.mubr.msk.bf16.gmra.mxu1 %vm557_vm2, %v2981_v3  ;;  %2662 = vmatmul.mubr.msk.bf16.gmra.mxu0 %vm557_vm2, %v2956_v57  ;;  %v1758_v57 = vmax.f32 %v3247_v21, 0.0  ;;  %v4235_v21 = vmov 0.0  }
 0x14c   :  { %1537 = vmatprep.mubr.bf16.mxu1 %v4230_v0  ;;  %2665 = vmatprep.mubr.msk.bf16.mxu0 %vm2876_vm3, %v4228_v39  ;;  %v1770_v39 = vmax.f32 %v3252_v25, 0.0 }
 0x14d   :  { %v3396_v58 = vpop.f32.mrf.mxu1  ;;  %v3398_v23 = vpop.f32.mrf.mxu0 }
 0x14f   :  { %v901_v24 = vpop.f32.mrf.mxu1  ;;  %v3400_v26 = vpop.f32.mrf.mxu0 }
 0x150   :  { %4232 = vst [vmem:[#allocation5_spill] sm:$0xff] %v3400_v26  ;;  %v1926_v30 = vmax.f32 %v901_v24, 0.0  ;;  %v1796_v26 = vmax.f32 %v3284_v41, 0.0 }
 0x151   :  { %v903_v31 = vpop.f32.mrf.mxu1  ;;  %v3403_v33 = vpop.f32.mrf.mxu0 }
 0x152   :  { %4233 = vst [vmem:[#allocation6_spill] sm:$0xff] %v3403_v33  ;;  %v2095_v34 = vmax.f32 %v1757_v29, %v1926_v30  ;;  %v1927_v35 = vmax.f32 %v903_v31, 0.0  ;;  %v1771_v31 = vmax.f32 %v3258_v32, 0.0  ;;  %v1784_v32 = vmax.f32 %v3277_v38, 0.0 }
 0x153   :  { %v907_v61 = vpop.f32.mrf.mxu1  ;;  %v3406_v48 = vpop.f32.mrf.mxu0  ;;  %2597 = vmatmul.mubr.msk.bf16.gmra.mxu1 %vm557_vm2, %v2997_v6  ;;  %2666 = vmatmul.mubr.msk.bf16.gmra.mxu0 %vm557_vm2, %v2981_v3  ;;  %v1760_v33 = vmax.f32 %v3279_v40, 0.0 }
 0x154   :  { %4234 = vst [vmem:[#allocation7_spill] sm:$0xff] %v3406_v48  ;;  %2264 = vst [vmem:[%s4227_s2 + $0x10] sm:$0xff] %v2095_v34  ;;  %v2096_v16 = vmax.f32 %v1758_v57, %v1927_v35  ;;  %v1939_v24 = vmax.f32 %v907_v61, 0.0  ;;  %1547 = vmatprep.mubr.bf16.mxu1 %v4230_v0  ;;  %2669 = vmatprep.mubr.msk.bf16.mxu0 %vm2876_vm3, %v4235_v21  ;;  %v1783_v34 = vmax.f32 %v3264_v37, 0.0  ;;  %v1759_v61 = vmax.f32 %v3266_v59, 0.0 }
 0x155   :  { %v909_v29 = vpop.f32.mrf.mxu1  ;;  %v3419_v30 = vpop.f32.mrf.mxu0 }
 0x156   :  { %4236 = vst [vmem:[#allocation8_spill] sm:$0xff] %v3419_v30  ;;  %2265 = vst [vmem:[%s4227_s2 + $0x18] sm:$0xff] %v2096_v16  ;;  %v2108_v3 = vmax.f32 %v1770_v39, %v1939_v24  ;;  %v1940_v25 = vmax.f32 %v909_v29, 0.0 }
 0x157   :  { %v911_v57 = vpop.f32.mrf.mxu1  ;;  %v1064_v35 = vpop.f32.mrf.mxu0 }
 0x158   :  { %2277 = vst [vmem:[%s4227_s2 + $0x78] sm:$0xff] %v2108_v3  ;;  %v2109_v0 = vmax.f32 %v1771_v31, %v1940_v25  ;;  %v1952_v30 = vmax.f32 %v911_v57, 0.0  ;;  %v1928_v48 = vmax.f32 %v1064_v35, 0.0  ;;  %v1772_v31 = vmax.f32 %v3286_v5, 0.0 }
 0x159   :  { %v913_v16 = vpop.f32.mrf.mxu1  ;;  %v1066_v39 = vpop.f32.mrf.mxu0  ;;  %v4237_v5 = vmov 0  }
 0x15a   :  { %2278 = vst [vmem:[%s4227_s2 + $0x80] sm:$0xff] %v2109_v0  ;;  %v2121_v37 = vmax.f32 %v1783_v34, %v1952_v30  ;;  %v2097_v24 = vmax.f32 %v1759_v61, %v1928_v48  ;;  %v1953_v59 = vmax.f32 %v913_v16, 0.0  ;;  %v1929_v29 = vmax.f32 %v1066_v39, 0.0 }
 0x15b   :  { %v917_v3 = vpop.f32.mrf.mxu1  ;;  %v1070_v25 = vpop.f32.mrf.mxu0  ;;  %2598 = vmatmul.mubr.msk.bf16.gmra.mxu1 %vm557_vm2, %v3013_v9  ;;  %2670 = vmatmul.mubr.msk.bf16.gmra.mxu0 %vm557_vm2, %v2997_v6  ;;  %v1797_v48 = vmax.f32 %v3288_v42, 0.0  ;;  %v1773_v6 = vmax.f32 %v3290_v43, 0.0  ;;  %v1785_v42 = vmax.f32 %v3294_v47, 0.0 }
 0x15c   :  { %2290 = vst [vmem:[%s4227_s2 + $0xe0] sm:$0xff] %v2121_v37  ;;  %2266 = vst [vmem:[%s4227_s2 + $0x20] sm:$0xff] %v2097_v24  ;;  %v2122_v0 = vmax.f32 %v1784_v32, %v1953_v59  ;;  %v2098_v38 = vmax.f32 %v1760_v33, %v1929_v29  ;;  %v1965_v40 = vmax.f32 %v917_v3, 0.0  ;;  %v1941_v41 = vmax.f32 %v1070_v25, 0.0  ;;  %1557 = vmatprep.mubr.bf16.mxu1 %v4237_v5 }
 0x15d   :  { %2673 = vmatprep.mubr.msk.bf16.mxu0 %vm2876_vm3, %v4235_v21  ;;  %v919_v30 = vpop.f32.mrf.mxu1  ;;  %v1072_v34 = vpop.f32.mrf.mxu0  ;;  %v1809_v32 = vmax.f32 %v3292_v44, 0.0  ;;  %v1810_v59 = vmax.f32 %v3305_v49, 0.0  ;;  %v1786_v44 = vmax.f32 %v3307_v4, 0.0  ;;  %v1798_v49 = vmax.f32 %v3311_v51, 0.0 }
 0x15e   :  { %2291 = vst [vmem:[%s4227_s2 + $0xe8] sm:$0xff] %v2122_v0  ;;  %2267 = vst [vmem:[%s4227_s2 + $0x28] sm:$0xff] %v2098_v38  ;;  %v2134_v33 = vmax.f32 %v1796_v26, %v1965_v40  ;;  %v2110_v57 = vmax.f32 %v1772_v31, %v1941_v41  ;;  %v1966_v35 = vmax.f32 %v919_v30, 0.0  ;;  %v1942_v61 = vmax.f32 %v1072_v34, 0.0  ;;  %v2842_v41 = vld [vmem:[%s4225_s0 + $0x38] sm:$0xff]  }
 0x15f   :  { %v921_v16 = vpop.f32.mrf.mxu1  ;;  %v1074_v43 = vpop.f32.mrf.mxu0  ;;  %v1822_v38 = vmax.f32 %v3309_v50, 0.0  ;;  %v1823_v30 = vmax.f32 %v3313_v7, 0.0  ;;  %v1811_v7 = vmax.f32 %v3319_v53, 0.0 }
 0x160   :  { %2303 = vst [vmem:[%s4227_s2 + $0x148] sm:$0xff] %v2134_v33  ;;  %2279 = vst [vmem:[%s4227_s2 + $0x88] sm:$0xff] %v2110_v57  ;;  %v2135_v39 = vmax.f32 %v1797_v48, %v1966_v35  ;;  %v2111_v37 = vmax.f32 %v1773_v6, %v1942_v61  ;;  %v1978_v26 = vmax.f32 %v921_v16, 0.0  ;;  %v1954_v24 = vmax.f32 %v1074_v43, 0.0 }
 0x161   :  { %v923_v29 = vpop.f32.mrf.mxu1  ;;  %v1076_v47 = vpop.f32.mrf.mxu0 }
 0x162   :  { %2304 = vst [vmem:[%s4227_s2 + $0x150] sm:$0xff] %v2135_v39  ;;  %2280 = vst [vmem:[%s4227_s2 + $0x90] sm:$0xff] %v2111_v37  ;;  %v2147_v31 = vmax.f32 %v1809_v32, %v1978_v26  ;;  %v2123_v3 = vmax.f32 %v1785_v42, %v1954_v24  ;;  %v1979_v25 = vmax.f32 %v923_v29, 0.0  ;;  %v1955_v0 = vmax.f32 %v1076_v47, 0.0 }
 0x163   :  { %v927_v40 = vpop.f32.mrf.mxu1  ;;  %v1080_v4 = vpop.f32.mrf.mxu0  ;;  %2599 = vmatmul.mubr.msk.bf16.gmra.mxu1 %vm557_vm2, %v2842_v41  ;;  %2674 = vmatmul.mubr.msk.bf16.gmra.mxu0 %vm557_vm2, %v3013_v9  ;;  %v1799_v9 = vmax.f32 %v3315_v52, 0.0  ;;  %v1835_v42 = vmax.f32 %v3317_v27, 0.0  ;;  %v1836_v24 = vmax.f32 %v3327_v54, 0.0  ;;  %v1812_v27 = vmax.f32 %v3329_v55, 0.0 }
 0x164   :  { %2316 = vst [vmem:[%s4227_s2 + $0x1b0] sm:$0xff] %v2147_v31  ;;  %2292 = vst [vmem:[%s4227_s2 + $0xf0] sm:$0xff] %v2123_v3  ;;  %v2148_v50 = vmax.f32 %v1810_v59, %v1979_v25  ;;  %v2124_v51 = vmax.f32 %v1786_v44, %v1955_v0  ;;  %v1991_v48 = vmax.f32 %v927_v40, 0.0  ;;  %v1967_v6 = vmax.f32 %v1080_v4, 0.0  ;;  %1567 = vmatprep.mubr.bf16.mxu1 %v4237_v5  ;;  %v2843_v0 = vld [vmem:[%s4225_s0 + $0x40] sm:$0xff]  }
 0x165   :  { %2677 = vmatprep.mubr.msk.bf16.mxu0 %vm2876_vm3, %v4235_v21  ;;  %v929_v34 = vpop.f32.mrf.mxu1  ;;  %v1082_v33 = vpop.f32.mrf.mxu0  ;;  %v1848_v3 = vmax.f32 %v3331_v56, 0.0  ;;  %v1824_v54 = vmax.f32 %v3333_v60, 0.0  ;;  %v1849_v40 = vmax.f32 %v3335_v62, 0.0  ;;  %v1825_v4 = vmax.f32 %v3337_v46, 0.0 }
 0x166   :  { %2317 = vst [vmem:[%s4227_s2 + $0x1b8] sm:$0xff] %v2148_v50  ;;  %2293 = vst [vmem:[%s4227_s2 + $0xf8] sm:$0xff] %v2124_v51  ;;  %v2160_v57 = vmax.f32 %v1822_v38, %v1991_v48  ;;  %v2136_v35 = vmax.f32 %v1798_v49, %v1967_v6  ;;  %v1992_v61 = vmax.f32 %v929_v34, 0.0  ;;  %v1968_v32 = vmax.f32 %v1082_v33, 0.0 }
 0x167   :  { %v931_v16 = vpop.f32.mrf.mxu1  ;;  %v1084_v52 = vpop.f32.mrf.mxu0  ;;  %v1837_v62 = vmax.f32 %v3341_v1, 0.0 }
 0x168   :  { %2329 = vst [vmem:[%s4227_s2 + $0x218] sm:$0xff] %v2160_v57  ;;  %2305 = vst [vmem:[%s4227_s2 + $0x158] sm:$0xff] %v2136_v35  ;;  %v2161_v43 = vmax.f32 %v1823_v30, %v1992_v61  ;;  %v2137_v39 = vmax.f32 %v1799_v9, %v1968_v32  ;;  %v2004_v37 = vmax.f32 %v931_v16, 0.0  ;;  %v1980_v26 = vmax.f32 %v1084_v52, 0.0 }
 0x169   :  { %v933_v59 = vpop.f32.mrf.mxu1  ;;  %v1086_v53 = vpop.f32.mrf.mxu0  ;;  %v1861_v9 = vmax.f32 %v3339_v63, 0.0  ;;  %v1862_v32 = vmax.f32 %v3350_v2, 0.0  ;;  %v1838_v63 = vmax.f32 %v3352_v8, 0.0  ;;  %v1850_v2 = vmax.f32 %v3356_v11, 0.0 }
 0x16a   :  { %2330 = vst [vmem:[%s4227_s2 + $0x220] sm:$0xff] %v2161_v43  ;;  %2306 = vst [vmem:[%s4227_s2 + $0x160] sm:$0xff] %v2137_v39  ;;  %v2173_v44 = vmax.f32 %v1835_v42, %v2004_v37  ;;  %v2149_v29 = vmax.f32 %v1811_v7, %v1980_v26  ;;  %v2005_v47 = vmax.f32 %v933_v59, 0.0  ;;  %v1981_v31 = vmax.f32 %v1086_v53, 0.0  ;;  %v2844_v26 = vld [vmem:[%s4225_s0 + $0x48] sm:$0xff]  }
 0x16b   :  { %v937_v25 = vpop.f32.mrf.mxu1  ;;  %v1090_v55 = vpop.f32.mrf.mxu0  ;;  %2600 = vmatmul.mubr.msk.bf16.gmra.mxu1 %vm557_vm2, %v2843_v0  ;;  %2678 = vmatmul.mubr.msk.bf16.gmra.mxu0 %vm557_vm2, %v2842_v41  ;;  %v1874_v39 = vmax.f32 %v3354_v10, 0.0  ;;  %v1875_v59 = vmax.f32 %v3358_v12, 0.0  ;;  %v1851_v53 = vmax.f32 %v3360_v13, 0.0  ;;  %v1863_v12 = vmax.f32 %v3364_v36, 0.0 }
 0x16c   :  { %2342 = vst [vmem:[%s4227_s2 + $0x280] sm:$0xff] %v2173_v44  ;;  %2318 = vst [vmem:[%s4227_s2 + $0x1c0] sm:$0xff] %v2149_v29  ;;  %v2174_v56 = vmax.f32 %v1836_v24, %v2005_v47  ;;  %v2150_v60 = vmax.f32 %v1812_v27, %v1981_v31  ;;  %v2017_v38 = vmax.f32 %v937_v25, 0.0  ;;  %v1993_v49 = vmax.f32 %v1090_v55, 0.0  ;;  %1577 = vmatprep.mubr.bf16.mxu1 %v4237_v5 }
 0x16d   :  { %2681 = vmatprep.mubr.msk.bf16.mxu0 %vm2876_vm3, %v4235_v21  ;;  %v939_v41 = vpop.f32.mrf.mxu1  ;;  %v1092_v50 = vpop.f32.mrf.mxu0  ;;  %v1887_v25 = vmax.f32 %v3362_v14, 0.0  ;;  %v1864_v14 = vmax.f32 %v3375_v28, 0.0 }
 0x16e   :  { %2343 = vst [vmem:[%s4227_s2 + $0x288] sm:$0xff] %v2174_v56  ;;  %2319 = vst [vmem:[%s4227_s2 + $0x1c8] sm:$0xff] %v2150_v60  ;;  %v2186_v51 = vmax.f32 %v1848_v3, %v2017_v38  ;;  %v2162_v48 = vmax.f32 %v1824_v54, %v1993_v49  ;;  %v2018_v6 = vmax.f32 %v939_v41, 0.0  ;;  %v1994_v30 = vmax.f32 %v1092_v50, 0.0 }
 0x16f   :  { %v941_v34 = vpop.f32.mrf.mxu1  ;;  %v1094_v46 = vpop.f32.mrf.mxu0  ;;  %v1888_v49 = vmax.f32 %v3373_v15, 0.0  ;;  %v1876_v15 = vmax.f32 %v3379_v18, 0.0 }
 0x170   :  { %2355 = vst [vmem:[%s4227_s2 + $0x2e8] sm:$0xff] %v2186_v51  ;;  %2331 = vst [vmem:[%s4227_s2 + $0x228] sm:$0xff] %v2162_v48  ;;  %v2187_v33 = vmax.f32 %v1849_v40, %v2018_v6  ;;  %v2163_v57 = vmax.f32 %v1825_v4, %v1994_v30  ;;  %v2030_v35 = vmax.f32 %v941_v34, 0.0  ;;  %v2006_v61 = vmax.f32 %v1094_v46, 0.0  ;;  %v2845_v30 = vld [vmem:[%s4225_s0 + $0x50] sm:$0xff]  }
 0x171   :  { %v943_v42 = vpop.f32.mrf.mxu1  ;;  %v1096_v1 = vpop.f32.mrf.mxu0  ;;  %v1900_v48 = vmax.f32 %v3377_v17, 0.0  ;;  %v1901_v34 = vmax.f32 %v3381_v19, 0.0  ;;  %v1877_v46 = vmax.f32 %v3383_v20, 0.0  ;;  %v1889_v19 = vmax.f32 %v3387_v45, 0.0 }
 0x172   :  { %2356 = vst [vmem:[%s4227_s2 + $0x2f0] sm:$0xff] %v2187_v33  ;;  %2332 = vst [vmem:[%s4227_s2 + $0x230] sm:$0xff] %v2163_v57  ;;  %v2199_v7 = vmax.f32 %v1861_v9, %v2030_v35  ;;  %v2175_v16 = vmax.f32 %v1837_v62, %v2006_v61  ;;  %v2031_v52 = vmax.f32 %v943_v42, 0.0  ;;  %v2007_v43 = vmax.f32 %v1096_v1, 0.0 }
 0x173   :  { %v947_v37 = vpop.f32.mrf.mxu1  ;;  %v1100_v8 = vpop.f32.mrf.mxu0  ;;  %2601 = vmatmul.mubr.msk.bf16.gmra.mxu1 %vm557_vm2, %v2844_v26  ;;  %2682 = vmatmul.mubr.msk.bf16.gmra.mxu0 %vm557_vm2, %v2843_v0  ;;  %v1913_v42 = vmax.f32 %v3385_v22, 0.0  ;;  %v1890_v22 = vmax.f32 %v3398_v23, 0.0  ;;  %v4238_v23 = vld [vmem:[#allocation5_spill] sm:$0xff] }
 0x174   :  { %2368 = vst [vmem:[%s4227_s2 + $0x350] sm:$0xff] %v2199_v7  ;;  %2344 = vst [vmem:[%s4227_s2 + $0x290] sm:$0xff] %v2175_v16  ;;  %v2200_v10 = vmax.f32 %v1862_v32, %v2031_v52  ;;  %v2176_v11 = vmax.f32 %v1838_v63, %v2007_v43  ;;  %v2043_v24 = vmax.f32 %v947_v37, 0.0  ;;  %v2019_v27 = vmax.f32 %v1100_v8, 0.0  ;;  %1587 = vmatprep.mubr.bf16.mxu1 %v4237_v5 }
 0x175   :  { %2685 = vmatprep.mubr.msk.bf16.mxu0 %vm2876_vm3, %v4235_v21  ;;  %v949_v44 = vpop.f32.mrf.mxu1  ;;  %v1102_v29 = vpop.f32.mrf.mxu0 }
 0x176   :  { %2369 = vst [vmem:[%s4227_s2 + $0x358] sm:$0xff] %v2200_v10  ;;  %2345 = vst [vmem:[%s4227_s2 + $0x298] sm:$0xff] %v2176_v11  ;;  %v2212_v47 = vmax.f32 %v1874_v39, %v2043_v24  ;;  %v2188_v31 = vmax.f32 %v1850_v2, %v2019_v27  ;;  %v2044_v3 = vmax.f32 %v949_v44, 0.0  ;;  %v2020_v54 = vmax.f32 %v1102_v29, 0.0 }
 0x177   :  { %v951_v55 = vpop.f32.mrf.mxu1  ;;  %v1104_v13 = vpop.f32.mrf.mxu0  ;;  %v1914_v39 = vmax.f32 %v3396_v58, 0.0  ;;  %v2846_v58 = vld [vmem:[%s4225_s0 + $0x58] sm:$0xff]   ;;  %v1902_v27 = vmax.f32 %v4238_v23, 0.0 }
 0x178   :  { %2381 = vst [vmem:[%s4227_s2 + $0x3b8] sm:$0xff] %v2212_v47  ;;  %2357 = vst [vmem:[%s4227_s2 + $0x2f8] sm:$0xff] %v2188_v31  ;;  %v2213_v0 = vmax.f32 %v1875_v59, %v2044_v3  ;;  %v2189_v56 = vmax.f32 %v1851_v53, %v2020_v54  ;;  %v2056_v60 = vmax.f32 %v951_v55, 0.0  ;;  %v2032_v38 = vmax.f32 %v1104_v13, 0.0  ;;  %v4239_v31 = vld [vmem:[#allocation6_spill] sm:$0xff]  ;;  %v4240_v55 = vld [vmem:[#allocation7_spill] sm:$0xff] }
 0x179   :  { %v953_v40 = vpop.f32.mrf.mxu1  ;;  %v1106_v36 = vpop.f32.mrf.mxu0  ;;  %v1903_v3 = vmax.f32 %v4239_v31, 0.0  ;;  %v1915_v13 = vmax.f32 %v4240_v55, 0.0 }
 0x17a   :  { %2382 = vst [vmem:[%s4227_s2 + $0x3c0] sm:$0xff] %v2213_v0  ;;  %2358 = vst [vmem:[%s4227_s2 + $0x300] sm:$0xff] %v2189_v56  ;;  %v2225_v4 = vmax.f32 %v1887_v25, %v2056_v60  ;;  %v2201_v41 = vmax.f32 %v1863_v12, %v2032_v38  ;;  %v2057_v50 = vmax.f32 %v953_v40, 0.0  ;;  %v2033_v51 = vmax.f32 %v1106_v36, 0.0 }
 0x17b   :  { %v957_v6 = vpop.f32.mrf.mxu1  ;;  %v1110_v28 = vpop.f32.mrf.mxu0  ;;  %2602 = vmatmul.mubr.msk.bf16.gmra.mxu1 %vm557_vm2, %v2845_v30  ;;  %2686 = vmatmul.mubr.msk.bf16.gmra.mxu0 %vm557_vm2, %v2844_v26 }
 0x17c   :  { %2394 = vst [vmem:[%s4227_s2 + $0x420] sm:$0xff] %v2225_v4  ;;  %2370 = vst [vmem:[%s4227_s2 + $0x360] sm:$0xff] %v2201_v41  ;;  %v2226_v17 = vmax.f32 %v1888_v49, %v2057_v50  ;;  %v2202_v18 = vmax.f32 %v1864_v14, %v2033_v51  ;;  %v2069_v9 = vmax.f32 %v957_v6, 0.0  ;;  %v2045_v62 = vmax.f32 %v1110_v28, 0.0  ;;  %1597 = vmatprep.mubr.bf16.mxu1 %v4237_v5  ;;  %v4241_v49 = vld [vmem:[#allocation8_spill] sm:$0xff]  ;;  %v2847_v50 = vld [vmem:[%s4225_s0 + $0x60] sm:$0xff]  }
 0x17d   :  { %2689 = vmatprep.mubr.msk.bf16.mxu0 %vm2876_vm3, %v4235_v21  ;;  %v959_v33 = vpop.f32.mrf.mxu1  ;;  %v1112_v57 = vpop.f32.mrf.mxu0  ;;  %v1916_v14 = vmax.f32 %v4241_v49, 0.0 }
 0x17e   :  { %2395 = vst [vmem:[%s4227_s2 + $0x428] sm:$0xff] %v2226_v17  ;;  %2371 = vst [vmem:[%s4227_s2 + $0x368] sm:$0xff] %v2202_v18  ;;  %v2238_v35 = vmax.f32 %v1900_v48, %v2069_v9  ;;  %v2214_v61 = vmax.f32 %v1876_v15, %v2045_v62  ;;  %v2070_v32 = vmax.f32 %v959_v33, 0.0  ;;  %v2046_v63 = vmax.f32 %v1112_v57, 0.0 }
 0x17f   :  { %v961_v1 = vpop.f32.mrf.mxu1  ;;  %v1114_v20 = vpop.f32.mrf.mxu0 }
 0x180   :  { %2407 = vst [vmem:[%s4227_s2 + $0x488] sm:$0xff] %v2238_v35  ;;  %2383 = vst [vmem:[%s4227_s2 + $0x3c8] sm:$0xff] %v2214_v61  ;;  %v2239_v7 = vmax.f32 %v1901_v34, %v2070_v32  ;;  %v2215_v16 = vmax.f32 %v1877_v46, %v2046_v63  ;;  %v2082_v52 = vmax.f32 %v961_v1, 0.0  ;;  %v2058_v43 = vmax.f32 %v1114_v20, 0.0 }
 0x181   :  { %v963_v2 = vpop.f32.mrf.mxu1  ;;  %v1116_v45 = vpop.f32.mrf.mxu0 }
 0x182   :  { %2408 = vst [vmem:[%s4227_s2 + $0x490] sm:$0xff] %v2239_v7  ;;  %2384 = vst [vmem:[%s4227_s2 + $0x3d0] sm:$0xff] %v2215_v16  ;;  %v2251_v37 = vmax.f32 %v1913_v42, %v2082_v52  ;;  %v2227_v8 = vmax.f32 %v1889_v19, %v2058_v43  ;;  %v2083_v26 = vmax.f32 %v963_v2, 0.0  ;;  %v2059_v10 = vmax.f32 %v1116_v45, 0.0 }
 0x183   :  { %v1120_v11 = vpop.f32.mrf.mxu0  ;;  %v3635_v24 = vpop.f32.mrf.mxu1  ;;  %2603 = vmatmul.mubr.msk.bf16.gmra.mxu1 %vm557_vm2, %v2846_v58  ;;  %2690 = vmatmul.mubr.msk.bf16.gmra.mxu0 %vm557_vm2, %v2845_v30 }
 0x184   :  { %2420 = vst [vmem:[%s4227_s2 + $0x4f0] sm:$0xff] %v2251_v37  ;;  %2396 = vst [vmem:[%s4227_s2 + $0x430] sm:$0xff] %v2227_v8  ;;  %v2252_v59 = vmax.f32 %v1914_v39, %v2083_v26  ;;  %v2228_v53 = vmax.f32 %v1890_v22, %v2059_v10  ;;  %v2071_v44 = vmax.f32 %v1120_v11, 0.0  ;;  %1607 = vmatprep.mubr.bf16.mxu1 %v4237_v5  ;;  %2693 = vmatprep.mubr.msk.bf16.mxu0 %vm2876_vm3, %v4235_v21 }
 0x185   :  { %v1122_v29 = vpop.f32.mrf.mxu0  ;;  %v3652_v47 = vpop.f32.mrf.mxu1 }
 0x186   :  { %2421 = vst [vmem:[%s4227_s2 + $0x4f8] sm:$0xff] %v2252_v59  ;;  %2397 = vst [vmem:[%s4227_s2 + $0x438] sm:$0xff] %v2228_v53  ;;  %v2240_v54 = vmax.f32 %v1902_v27, %v2071_v44  ;;  %v2072_v25 = vmax.f32 %v1122_v29, 0.0 }
 0x187   :  { %v1124_v12 = vpop.f32.mrf.mxu0  ;;  %v3661_v5 = vpop.f32.mrf.mxu1 }
 0x188   :  { %2409 = vst [vmem:[%s4227_s2 + $0x498] sm:$0xff] %v2240_v54  ;;  %v2241_v0 = vmax.f32 %v1903_v3, %v2072_v25  ;;  %v2084_v56 = vmax.f32 %v1124_v12, 0.0  ;;  %v1761_v54 = vmax.f32 %v3635_v24, 0.0 }
 0x189   :  { %v1126_v60 = vpop.f32.mrf.mxu0  ;;  %v3667_v38 = vpop.f32.mrf.mxu1 }
 0x18a   :  { %2410 = vst [vmem:[%s4227_s2 + $0x4a0] sm:$0xff] %v2241_v0  ;;  %v2253_v40 = vmax.f32 %v1915_v13, %v2084_v56  ;;  %v2085_v36 = vmax.f32 %v1126_v60, 0.0  ;;  %v1762_v13 = vmax.f32 %v3652_v47, 0.0 }
 0x18b   :  { %v3673_v4 = vpop.f32.mrf.mxu1  ;;  %v3675_v41 = vpop.f32.mrf.mxu0  ;;  %2604 = vmatmul.mubr.msk.bf16.gmra.mxu1 %vm557_vm2, %v2847_v50  ;;  %2694 = vmatmul.mubr.msk.bf16.gmra.mxu0 %vm557_vm2, %v2846_v58 }
 0x18c   :  { %2422 = vst [vmem:[%s4227_s2 + $0x500] sm:$0xff] %v2253_v40  ;;  %v2254_v51 = vmax.f32 %v1916_v14, %v2085_v36  ;;  %2697 = vmatprep.mubr.msk.bf16.mxu0 %vm2876_vm3, %v4235_v21  ;;  %v1774_v14 = vmax.f32 %v3661_v5, 0.0 }
 0x18d   :  { %v3687_v48 = vpop.f32.mrf.mxu1  ;;  %v3689_v15 = vpop.f32.mrf.mxu0 }
 0x18e   :  { %2423 = vst [vmem:[%s4227_s2 + $0x508] sm:$0xff] %v2254_v51  ;;  %v1775_v51 = vmax.f32 %v3667_v38, 0.0  ;;  %v1788_v38 = vmax.f32 %v3687_v48, 0.0 }
 0x18f   :  { %v3694_v6 = vpop.f32.mrf.mxu1  ;;  %v3696_v28 = vpop.f32.mrf.mxu0 }
 0x191   :  { %v3698_v30 = vpop.f32.mrf.mxu1  ;;  %v3700_v17 = vpop.f32.mrf.mxu0 }
 0x193   :  { %v3702_v18 = vpop.f32.mrf.mxu1  ;;  %v3704_v9 = vpop.f32.mrf.mxu0  ;;  %2698 = vmatmul.mubr.msk.bf16.gmra.mxu0 %vm557_vm2, %v2847_v50 }
 0x195   :  { %v3707_v21 = vpop.f32.mrf.mxu1  ;;  %v3709_v62 = vpop.f32.mrf.mxu0 }
 0x197   :  { %v3711_v34 = vpop.f32.mrf.mxu1  ;;  %v3713_v46 = vpop.f32.mrf.mxu0 }
 0x199   :  { %v3715_v33 = vpop.f32.mrf.mxu1  ;;  %v3717_v57 = vpop.f32.mrf.mxu0 }
 0x19b   :  { %v3719_v35 = vpop.f32.mrf.mxu1  ;;  %v3721_v61 = vpop.f32.mrf.mxu0 }
 0x19d   :  { %v3723_v32 = vpop.f32.mrf.mxu1  ;;  %v3725_v63 = vpop.f32.mrf.mxu0 }
 0x19f   :  { %v3727_v42 = vpop.f32.mrf.mxu1  ;;  %v3729_v19 = vpop.f32.mrf.mxu0 }
 0x1a1   :  { %v3731_v1 = vpop.f32.mrf.mxu1  ;;  %v3733_v20 = vpop.f32.mrf.mxu0 }
 0x1a3   :  { %v3735_v7 = vpop.f32.mrf.mxu1  ;;  %v3737_v16 = vpop.f32.mrf.mxu0 }
 0x1a5   :  { %v3739_v52 = vpop.f32.mrf.mxu1  ;;  %v3741_v43 = vpop.f32.mrf.mxu0 }
 0x1a7   :  { %v3743_v39 = vpop.f32.mrf.mxu1  ;;  %v3745_v22 = vpop.f32.mrf.mxu0 }
 0x1a9   :  { %v3747_v2 = vpop.f32.mrf.mxu1  ;;  %v3749_v45 = vpop.f32.mrf.mxu0 }
 0x1ab   :  { %v3751_v37 = vpop.f32.mrf.mxu1  ;;  %v3753_v8 = vpop.f32.mrf.mxu0 }
 0x1ad   :  { %v3755_v26 = vpop.f32.mrf.mxu1  ;;  %v3757_v10 = vpop.f32.mrf.mxu0 }
 0x1af   :  { %v3759_v11 = vpop.f32.mrf.mxu1  ;;  %v3761_v58 = vpop.f32.mrf.mxu0 }
 0x1b1   :  { %v3763_v23 = vpop.f32.mrf.mxu1  ;;  %v3765_v27 = vpop.f32.mrf.mxu0 }
 0x1b3   :  { %v3767_v59 = vpop.f32.mrf.mxu1  ;;  %v3769_v53 = vpop.f32.mrf.mxu0 }
 0x1b5   :  { %v3771_v44 = vpop.f32.mrf.mxu1  ;;  %v3773_v29 = vpop.f32.mrf.mxu0 }
 0x1b7   :  { %v1227_v31 = vpop.f32.mrf.mxu1  ;;  %v3775_v3 = vpop.f32.mrf.mxu0 }
 0x1b8   :  { %v1930_v25 = vmax.f32 %v1227_v31, 0.0 }
 0x1b9   :  { %v1229_v12 = vpop.f32.mrf.mxu1  ;;  %v3778_v55 = vpop.f32.mrf.mxu0 }
 0x1ba   :  { %v2099_v0 = vmax.f32 %v1761_v54, %v1930_v25  ;;  %v1931_v56 = vmax.f32 %v1229_v12, 0.0  ;;  %v1787_v54 = vmax.f32 %v3673_v4, 0.0  ;;  %v1763_v12 = vmax.f32 %v3675_v41, 0.0 }
 0x1bb   :  { %v1233_v60 = vpop.f32.mrf.mxu1  ;;  %v3781_v49 = vpop.f32.mrf.mxu0 }
 0x1bc   :  { %2268 = vst [vmem:[%s4227_s2 + $0x30] sm:$0xff] %v2099_v0  ;;  %v2100_v40 = vmax.f32 %v1762_v13, %v1931_v56  ;;  %v1943_v36 = vmax.f32 %v1233_v60, 0.0  ;;  %v1764_v60 = vmax.f32 %v3689_v15, 0.0 }
 0x1bd   :  { %v1235_v24 = vpop.f32.mrf.mxu1  ;;  %v3787_v50 = vpop.f32.mrf.mxu0 }
 0x1be   :  { %4242 = vst [vmem:[#allocation5_spill] sm:$0xff] %v3787_v50  ;;  %2269 = vst [vmem:[%s4227_s2 + $0x38] sm:$0xff] %v2100_v40  ;;  %v2112_v47 = vmax.f32 %v1774_v14, %v1943_v36  ;;  %v1944_v31 = vmax.f32 %v1235_v24, 0.0  ;;  %v1800_v50 = vmax.f32 %v3694_v6, 0.0  ;;  %v1777_v6 = vmax.f32 %v3700_v17, 0.0 }
 0x1bf   :  { %v1237_v5 = vpop.f32.mrf.mxu1  ;;  %v1390_v25 = vpop.f32.mrf.mxu0 }
 0x1c0   :  { %2281 = vst [vmem:[%s4227_s2 + $0x98] sm:$0xff] %v2112_v47  ;;  %v2113_v13 = vmax.f32 %v1775_v51, %v1944_v31  ;;  %v1956_v0 = vmax.f32 %v1237_v5, 0.0  ;;  %v1932_v56 = vmax.f32 %v1390_v25, 0.0  ;;  %v1776_v51 = vmax.f32 %v3696_v28, 0.0 }
 0x1c1   :  { %v1239_v40 = vpop.f32.mrf.mxu1  ;;  %v1392_v14 = vpop.f32.mrf.mxu0  ;;  %v1801_v25 = vmax.f32 %v3698_v30, 0.0  ;;  %v1789_v30 = vmax.f32 %v3704_v9, 0.0 }
 0x1c2   :  { %2282 = vst [vmem:[%s4227_s2 + $0xa0] sm:$0xff] %v2113_v13  ;;  %v2125_v4 = vmax.f32 %v1787_v54, %v1956_v0  ;;  %v2101_v36 = vmax.f32 %v1763_v12, %v1932_v56  ;;  %v1957_v41 = vmax.f32 %v1239_v40, 0.0  ;;  %v1933_v24 = vmax.f32 %v1392_v14, 0.0 }
 0x1c3   :  { %v1243_v47 = vpop.f32.mrf.mxu1  ;;  %v1396_v31 = vpop.f32.mrf.mxu0 }
 0x1c4   :  { %2294 = vst [vmem:[%s4227_s2 + $0x100] sm:$0xff] %v2125_v4  ;;  %2270 = vst [vmem:[%s4227_s2 + $0x40] sm:$0xff] %v2101_v36  ;;  %v2126_v48 = vmax.f32 %v1788_v38, %v1957_v41  ;;  %v2102_v15 = vmax.f32 %v1764_v60, %v1933_v24  ;;  %v1969_v54 = vmax.f32 %v1243_v47, 0.0  ;;  %v1945_v5 = vmax.f32 %v1396_v31, 0.0 }
 0x1c5   :  { %v1245_v12 = vpop.f32.mrf.mxu1  ;;  %v1398_v28 = vpop.f32.mrf.mxu0  ;;  %v1813_v60 = vmax.f32 %v3702_v18, 0.0  ;;  %v1814_v41 = vmax.f32 %v3707_v21, 0.0  ;;  %v1790_v18 = vmax.f32 %v3709_v62, 0.0  ;;  %v1802_v21 = vmax.f32 %v3713_v46, 0.0 }
 0x1c6   :  { %2295 = vst [vmem:[%s4227_s2 + $0x108] sm:$0xff] %v2126_v48  ;;  %2271 = vst [vmem:[%s4227_s2 + $0x48] sm:$0xff] %v2102_v15  ;;  %v2138_v13 = vmax.f32 %v1800_v50, %v1969_v54  ;;  %v2114_v0 = vmax.f32 %v1776_v51, %v1945_v5  ;;  %v1970_v56 = vmax.f32 %v1245_v12, 0.0  ;;  %v1946_v38 = vmax.f32 %v1398_v28, 0.0 }
 0x1c7   :  { %v1247_v40 = vpop.f32.mrf.mxu1  ;;  %v1400_v17 = vpop.f32.mrf.mxu0  ;;  %v1826_v15 = vmax.f32 %v3711_v34, 0.0  ;;  %v1827_v28 = vmax.f32 %v3715_v33, 0.0  ;;  %v1803_v34 = vmax.f32 %v3717_v57, 0.0  ;;  %v1815_v33 = vmax.f32 %v3721_v61, 0.0 }
 0x1c8   :  { %2307 = vst [vmem:[%s4227_s2 + $0x168] sm:$0xff] %v2138_v13  ;;  %2283 = vst [vmem:[%s4227_s2 + $0xa8] sm:$0xff] %v2114_v0  ;;  %v2139_v14 = vmax.f32 %v1801_v25, %v1970_v56  ;;  %v2115_v4 = vmax.f32 %v1777_v6, %v1946_v38  ;;  %v1982_v50 = vmax.f32 %v1247_v40, 0.0  ;;  %v1958_v36 = vmax.f32 %v1400_v17, 0.0 }
 0x1c9   :  { %v1249_v24 = vpop.f32.mrf.mxu1  ;;  %v1402_v9 = vpop.f32.mrf.mxu0 }
 0x1ca   :  { %2308 = vst [vmem:[%s4227_s2 + $0x170] sm:$0xff] %v2139_v14  ;;  %2284 = vst [vmem:[%s4227_s2 + $0xb0] sm:$0xff] %v2115_v4  ;;  %v2151_v51 = vmax.f32 %v1813_v60, %v1982_v50  ;;  %v2127_v47 = vmax.f32 %v1789_v30, %v1958_v36  ;;  %v1983_v31 = vmax.f32 %v1249_v24, 0.0  ;;  %v1959_v48 = vmax.f32 %v1402_v9, 0.0 }
 0x1cb   :  { %v1253_v54 = vpop.f32.mrf.mxu1  ;;  %v1406_v62 = vpop.f32.mrf.mxu0  ;;  %v1839_v30 = vmax.f32 %v3719_v35, 0.0  ;;  %v1840_v36 = vmax.f32 %v3723_v32, 0.0  ;;  %v1816_v35 = vmax.f32 %v3725_v63, 0.0  ;;  %v1828_v32 = vmax.f32 %v3729_v19, 0.0 }
 0x1cc   :  { %2320 = vst [vmem:[%s4227_s2 + $0x1d0] sm:$0xff] %v2151_v51  ;;  %2296 = vst [vmem:[%s4227_s2 + $0x110] sm:$0xff] %v2127_v47  ;;  %v2152_v5 = vmax.f32 %v1814_v41, %v1983_v31  ;;  %v2128_v25 = vmax.f32 %v1790_v18, %v1959_v48  ;;  %v1995_v6 = vmax.f32 %v1253_v54, 0.0  ;;  %v1971_v12 = vmax.f32 %v1406_v62, 0.0 }
 0x1cd   :  { %v1255_v13 = vpop.f32.mrf.mxu1  ;;  %v1408_v46 = vpop.f32.mrf.mxu0  ;;  %v1852_v47 = vmax.f32 %v3727_v42, 0.0  ;;  %v1853_v62 = vmax.f32 %v3731_v1, 0.0  ;;  %v1829_v42 = vmax.f32 %v3733_v20, 0.0  ;;  %v1841_v1 = vmax.f32 %v3737_v16, 0.0 }
 0x1ce   :  { %2321 = vst [vmem:[%s4227_s2 + $0x1d8] sm:$0xff] %v2152_v5  ;;  %2297 = vst [vmem:[%s4227_s2 + $0x118] sm:$0xff] %v2128_v25  ;;  %v2164_v0 = vmax.f32 %v1826_v15, %v1995_v6  ;;  %v2140_v56 = vmax.f32 %v1802_v21, %v1971_v12  ;;  %v1996_v38 = vmax.f32 %v1255_v13, 0.0  ;;  %v1972_v60 = vmax.f32 %v1408_v46, 0.0 }
 0x1cf   :  { %v1257_v40 = vpop.f32.mrf.mxu1  ;;  %v1410_v57 = vpop.f32.mrf.mxu0 }
 0x1d0   :  { %2333 = vst [vmem:[%s4227_s2 + $0x238] sm:$0xff] %v2164_v0  ;;  %2309 = vst [vmem:[%s4227_s2 + $0x178] sm:$0xff] %v2140_v56  ;;  %v2165_v17 = vmax.f32 %v1827_v28, %v1996_v38  ;;  %v2141_v14 = vmax.f32 %v1803_v34, %v1972_v60  ;;  %v2008_v4 = vmax.f32 %v1257_v40, 0.0  ;;  %v1984_v50 = vmax.f32 %v1410_v57, 0.0 }
 0x1d1   :  { %v1259_v41 = vpop.f32.mrf.mxu1  ;;  %v1412_v61 = vpop.f32.mrf.mxu0  ;;  %v1865_v34 = vmax.f32 %v3735_v7, 0.0  ;;  %v1866_v60 = vmax.f32 %v3739_v52, 0.0  ;;  %v1842_v7 = vmax.f32 %v3741_v43, 0.0  ;;  %v1854_v52 = vmax.f32 %v3745_v22, 0.0 }
 0x1d2   :  { %2334 = vst [vmem:[%s4227_s2 + $0x240] sm:$0xff] %v2165_v17  ;;  %2310 = vst [vmem:[%s4227_s2 + $0x180] sm:$0xff] %v2141_v14  ;;  %v2177_v18 = vmax.f32 %v1839_v30, %v2008_v4  ;;  %v2153_v24 = vmax.f32 %v1815_v33, %v1984_v50  ;;  %v2009_v9 = vmax.f32 %v1259_v41, 0.0  ;;  %v1985_v51 = vmax.f32 %v1412_v61, 0.0 }
 0x1d3   :  { %v1263_v31 = vpop.f32.mrf.mxu1  ;;  %v1416_v63 = vpop.f32.mrf.mxu0  ;;  %v1878_v14 = vmax.f32 %v3743_v39, 0.0  ;;  %v1879_v61 = vmax.f32 %v3747_v2, 0.0  ;;  %v1855_v39 = vmax.f32 %v3749_v45, 0.0  ;;  %v1867_v2 = vmax.f32 %v3753_v8, 0.0 }
 0x1d4   :  { %2346 = vst [vmem:[%s4227_s2 + $0x2a0] sm:$0xff] %v2177_v18  ;;  %2322 = vst [vmem:[%s4227_s2 + $0x1e0] sm:$0xff] %v2153_v24  ;;  %v2178_v48 = vmax.f32 %v1840_v36, %v2009_v9  ;;  %v2154_v15 = vmax.f32 %v1816_v35, %v1985_v51  ;;  %v2021_v21 = vmax.f32 %v1263_v31, 0.0  ;;  %v1997_v54 = vmax.f32 %v1416_v63, 0.0 }
 0x1d5   :  { %v1265_v5 = vpop.f32.mrf.mxu1  ;;  %v1418_v19 = vpop.f32.mrf.mxu0 }
 0x1d6   :  { %2347 = vst [vmem:[%s4227_s2 + $0x2a8] sm:$0xff] %v2178_v48  ;;  %2323 = vst [vmem:[%s4227_s2 + $0x1e8] sm:$0xff] %v2154_v15  ;;  %v2190_v25 = vmax.f32 %v1852_v47, %v2021_v21  ;;  %v2166_v6 = vmax.f32 %v1828_v32, %v1997_v54  ;;  %v2022_v12 = vmax.f32 %v1265_v5, 0.0  ;;  %v1998_v28 = vmax.f32 %v1418_v19, 0.0 }
 0x1d7   :  { %v1267_v13 = vpop.f32.mrf.mxu1  ;;  %v1420_v20 = vpop.f32.mrf.mxu0  ;;  %v1891_v32 = vmax.f32 %v3751_v37, 0.0  ;;  %v1892_v54 = vmax.f32 %v3755_v26, 0.0  ;;  %v1868_v37 = vmax.f32 %v3757_v10, 0.0  ;;  %v1880_v26 = vmax.f32 %v3761_v58, 0.0 }
 0x1d8   :  { %2359 = vst [vmem:[%s4227_s2 + $0x308] sm:$0xff] %v2190_v25  ;;  %2335 = vst [vmem:[%s4227_s2 + $0x248] sm:$0xff] %v2166_v6  ;;  %v2191_v46 = vmax.f32 %v1853_v62, %v2022_v12  ;;  %v2167_v0 = vmax.f32 %v1829_v42, %v1998_v28  ;;  %v2034_v56 = vmax.f32 %v1267_v13, 0.0  ;;  %v2010_v38 = vmax.f32 %v1420_v20, 0.0 }
 0x1d9   :  { %v1269_v30 = vpop.f32.mrf.mxu1  ;;  %v1422_v16 = vpop.f32.mrf.mxu0  ;;  %v1904_v6 = vmax.f32 %v3759_v11, 0.0  ;;  %v1905_v20 = vmax.f32 %v3763_v23, 0.0  ;;  %v1881_v11 = vmax.f32 %v3765_v27, 0.0  ;;  %v1893_v23 = vmax.f32 %v3769_v53, 0.0 }
 0x1da   :  { %2360 = vst [vmem:[%s4227_s2 + $0x310] sm:$0xff] %v2191_v46  ;;  %2336 = vst [vmem:[%s4227_s2 + $0x250] sm:$0xff] %v2167_v0  ;;  %v2203_v33 = vmax.f32 %v1865_v34, %v2034_v56  ;;  %v2179_v40 = vmax.f32 %v1841_v1, %v2010_v38  ;;  %v2035_v57 = vmax.f32 %v1269_v30, 0.0  ;;  %v2011_v17 = vmax.f32 %v1422_v16, 0.0 }
 0x1db   :  { %v1273_v4 = vpop.f32.mrf.mxu1  ;;  %v1426_v43 = vpop.f32.mrf.mxu0 }
 0x1dc   :  { %2372 = vst [vmem:[%s4227_s2 + $0x370] sm:$0xff] %v2203_v33  ;;  %2348 = vst [vmem:[%s4227_s2 + $0x2b0] sm:$0xff] %v2179_v40  ;;  %v2204_v50 = vmax.f32 %v1866_v60, %v2035_v57  ;;  %v2180_v36 = vmax.f32 %v1842_v7, %v2011_v17  ;;  %v2047_v35 = vmax.f32 %v1273_v4, 0.0  ;;  %v2023_v41 = vmax.f32 %v1426_v43, 0.0 }
 0x1dd   :  { %v1275_v18 = vpop.f32.mrf.mxu1  ;;  %v1428_v22 = vpop.f32.mrf.mxu0  ;;  %v1917_v7 = vmax.f32 %v3767_v59, 0.0  ;;  %v1918_v17 = vmax.f32 %v3771_v44, 0.0  ;;  %v1894_v59 = vmax.f32 %v3773_v29, 0.0  ;;  %v1906_v44 = vmax.f32 %v3775_v3, 0.0 }
 0x1de   :  { %2373 = vst [vmem:[%s4227_s2 + $0x378] sm:$0xff] %v2204_v50  ;;  %2349 = vst [vmem:[%s4227_s2 + $0x2b8] sm:$0xff] %v2180_v36  ;;  %v2216_v24 = vmax.f32 %v1878_v14, %v2047_v35  ;;  %v2192_v9 = vmax.f32 %v1854_v52, %v2023_v41  ;;  %v2048_v51 = vmax.f32 %v1275_v18, 0.0  ;;  %v2024_v47 = vmax.f32 %v1428_v22, 0.0 }
 0x1df   :  { %v1277_v31 = vpop.f32.mrf.mxu1  ;;  %v1430_v45 = vpop.f32.mrf.mxu0  ;;  %v1907_v22 = vmax.f32 %v3778_v55, 0.0 }
 0x1e0   :  { %2385 = vst [vmem:[%s4227_s2 + $0x3d8] sm:$0xff] %v2216_v24  ;;  %2361 = vst [vmem:[%s4227_s2 + $0x318] sm:$0xff] %v2192_v9  ;;  %v2217_v63 = vmax.f32 %v1879_v61, %v2048_v51  ;;  %v2193_v48 = vmax.f32 %v1855_v39, %v2024_v47  ;;  %v2060_v15 = vmax.f32 %v1277_v31, 0.0  ;;  %v2036_v21 = vmax.f32 %v1430_v45, 0.0  ;;  %v4243_v45 = vld [vmem:[#allocation5_spill] sm:$0xff] }
 0x1e1   :  { %v1279_v62 = vpop.f32.mrf.mxu1  ;;  %v1432_v8 = vpop.f32.mrf.mxu0  ;;  %v1919_v47 = vmax.f32 %v3781_v49, 0.0 }
 0x1e2   :  { %2386 = vst [vmem:[%s4227_s2 + $0x3e0] sm:$0xff] %v2217_v63  ;;  %2362 = vst [vmem:[%s4227_s2 + $0x320] sm:$0xff] %v2193_v48  ;;  %v2229_v42 = vmax.f32 %v1891_v32, %v2060_v15  ;;  %v2205_v5 = vmax.f32 %v1867_v2, %v2036_v21  ;;  %v2061_v19 = vmax.f32 %v1279_v62, 0.0  ;;  %v2037_v25 = vmax.f32 %v1432_v8, 0.0 }
 0x1e3   :  { %v1283_v12 = vpop.f32.mrf.mxu1  ;;  %v1436_v10 = vpop.f32.mrf.mxu0  ;;  %v1920_v63 = vmax.f32 %v4243_v45, 0.0 }
 0x1e4   :  { %2398 = vst [vmem:[%s4227_s2 + $0x440] sm:$0xff] %v2229_v42  ;;  %2374 = vst [vmem:[%s4227_s2 + $0x380] sm:$0xff] %v2205_v5  ;;  %v2230_v28 = vmax.f32 %v1892_v54, %v2061_v19  ;;  %v2206_v34 = vmax.f32 %v1868_v37, %v2037_v25  ;;  %v2073_v1 = vmax.f32 %v1283_v12, 0.0  ;;  %v2049_v13 = vmax.f32 %v1436_v10, 0.0 }
 0x1e5   :  { %v1285_v46 = vpop.f32.mrf.mxu1  ;;  %v1438_v58 = vpop.f32.mrf.mxu0 }
 0x1e6   :  { %2399 = vst [vmem:[%s4227_s2 + $0x448] sm:$0xff] %v2230_v28  ;;  %2375 = vst [vmem:[%s4227_s2 + $0x388] sm:$0xff] %v2206_v34  ;;  %v2242_v0 = vmax.f32 %v1904_v6, %v2073_v1  ;;  %v2218_v56 = vmax.f32 %v1880_v26, %v2049_v13  ;;  %v2074_v38 = vmax.f32 %v1285_v46, 0.0  ;;  %v2050_v60 = vmax.f32 %v1438_v58, 0.0 }
 0x1e7   :  { %v1287_v30 = vpop.f32.mrf.mxu1  ;;  %v1440_v27 = vpop.f32.mrf.mxu0 }
 0x1e8   :  { %2411 = vst [vmem:[%s4227_s2 + $0x4a8] sm:$0xff] %v2242_v0  ;;  %2387 = vst [vmem:[%s4227_s2 + $0x3e8] sm:$0xff] %v2218_v56  ;;  %v2243_v16 = vmax.f32 %v1905_v20, %v2074_v38  ;;  %v2219_v33 = vmax.f32 %v1881_v11, %v2050_v60  ;;  %v2086_v40 = vmax.f32 %v1287_v30, 0.0  ;;  %v2062_v57 = vmax.f32 %v1440_v27, 0.0 }
 0x1e9   :  { %v1289_v14 = vpop.f32.mrf.mxu1  ;;  %v1442_v53 = vpop.f32.mrf.mxu0 }
 0x1ea   :  { %2412 = vst [vmem:[%s4227_s2 + $0x4b0] sm:$0xff] %v2243_v16  ;;  %2388 = vst [vmem:[%s4227_s2 + $0x3f0] sm:$0xff] %v2219_v33  ;;  %v2255_v52 = vmax.f32 %v1917_v7, %v2086_v40  ;;  %v2231_v4 = vmax.f32 %v1893_v23, %v2062_v57  ;;  %v2087_v43 = vmax.f32 %v1289_v14, 0.0  ;;  %v2063_v50 = vmax.f32 %v1442_v53, 0.0 }
 0x1eb   :  { %v1446_v36 = vpop.f32.mrf.mxu0  ;;  %v3963_v35 = vpop.f32.mrf.mxu1 }
 0x1ec   :  { %2424 = vst [vmem:[%s4227_s2 + $0x510] sm:$0xff] %v2255_v52  ;;  %2400 = vst [vmem:[%s4227_s2 + $0x450] sm:$0xff] %v2231_v4  ;;  %v2256_v29 = vmax.f32 %v1918_v17, %v2087_v43  ;;  %v2232_v41 = vmax.f32 %v1894_v59, %v2063_v50  ;;  %v2075_v61 = vmax.f32 %v1446_v36, 0.0 }
 0x1ed   :  { %v1448_v39 = vpop.f32.mrf.mxu0  ;;  %v3972_v18 = vpop.f32.mrf.mxu1 }
 0x1ee   :  { %2425 = vst [vmem:[%s4227_s2 + $0x518] sm:$0xff] %v2256_v29  ;;  %2401 = vst [vmem:[%s4227_s2 + $0x458] sm:$0xff] %v2232_v41  ;;  %v2244_v3 = vmax.f32 %v1906_v44, %v2075_v61  ;;  %v2076_v24 = vmax.f32 %v1448_v39, 0.0  ;;  %v1765_v39 = vmax.f32 %v3963_v35, 0.0 }
 0x1ef   :  { %v1450_v9 = vpop.f32.mrf.mxu0  ;;  %v3981_v51 = vpop.f32.mrf.mxu1 }
 0x1f0   :  { %2413 = vst [vmem:[%s4227_s2 + $0x4b8] sm:$0xff] %v2244_v3  ;;  %v2245_v55 = vmax.f32 %v1907_v22, %v2076_v24  ;;  %v2088_v32 = vmax.f32 %v1450_v9, 0.0  ;;  %v1766_v9 = vmax.f32 %v3972_v18, 0.0  ;;  %v1778_v45 = vmax.f32 %v3981_v51, 0.0 }
 0x1f1   :  { %v1452_v2 = vpop.f32.mrf.mxu0  ;;  %v3987_v31 = vpop.f32.mrf.mxu1 }
 0x1f2   :  { %2414 = vst [vmem:[%s4227_s2 + $0x4c0] sm:$0xff] %v2245_v55  ;;  %v2257_v48 = vmax.f32 %v1919_v47, %v2088_v32  ;;  %v2089_v15 = vmax.f32 %v1452_v2, 0.0 }
 0x1f3   :  { %v3993_v21 = vpop.f32.mrf.mxu1  ;;  %v3995_v49 = vpop.f32.mrf.mxu0 }
 0x1f4   :  { %2426 = vst [vmem:[%s4227_s2 + $0x520] sm:$0xff] %v2257_v48  ;;  %v2258_v54 = vmax.f32 %v1920_v63, %v2089_v15 }
 0x1f5   :  { %v4000_v37 = vpop.f32.mrf.mxu1  ;;  %v2651_v62 = vpop.f32.mrf.mxu0 }
 0x1f6   :  { %2427 = vst [vmem:[%s4227_s2 + $0x528] sm:$0xff] %v2258_v54  ;;  %v1779_v54 = vmax.f32 %v3987_v31, 0.0 }
 0x1f7   :  { %v4005_v8 = vpop.f32.mrf.mxu1  ;;  %v4007_v42 = vpop.f32.mrf.mxu0 }
 0x1f9   :  { %v4009_v5 = vpop.f32.mrf.mxu1  ;;  %v2652_v19 = vpop.f32.mrf.mxu0 }
 0x1fa   :  { %v1791_v19 = vmax.f32 %v3993_v21, 0.0 }
 0x1fb   :  { %v4011_v25 = vpop.f32.mrf.mxu1  ;;  %v4013_v6 = vpop.f32.mrf.mxu0 }
 0x1fd   :  { %v4015_v26 = vpop.f32.mrf.mxu1  ;;  %v2655_v12 = vpop.f32.mrf.mxu0 }
 0x1ff   :  { %v4017_v10 = vpop.f32.mrf.mxu1  ;;  %v4019_v28 = vpop.f32.mrf.mxu0 }
 0x201   :  { %v4021_v34 = vpop.f32.mrf.mxu1  ;;  %v2656_v1 = vpop.f32.mrf.mxu0 }
 0x202   :  { %v1767_v1 = vmax.f32 %v3995_v49, 0.0  ;;  %v1804_v49 = vmax.f32 %v4005_v8, 0.0 }
 0x203   :  { %v4023_v13 = vpop.f32.mrf.mxu1  ;;  %v4025_v20 = vpop.f32.mrf.mxu0 }
 0x205   :  { %v4027_v11 = vpop.f32.mrf.mxu1  ;;  %v2659_v46 = vpop.f32.mrf.mxu0 }
 0x207   :  { %v4029_v58 = vpop.f32.mrf.mxu1  ;;  %v4031_v0 = vpop.f32.mrf.mxu0 }
 0x209   :  { %v4033_v56 = vpop.f32.mrf.mxu1  ;;  %v2660_v38 = vpop.f32.mrf.mxu0 }
 0x20b   :  { %v4035_v60 = vpop.f32.mrf.mxu1  ;;  %v4037_v7 = vpop.f32.mrf.mxu0 }
 0x20d   :  { %v4039_v23 = vpop.f32.mrf.mxu1  ;;  %v2663_v30 = vpop.f32.mrf.mxu0 }
 0x20f   :  { %v4041_v27 = vpop.f32.mrf.mxu1  ;;  %v4043_v16 = vpop.f32.mrf.mxu0 }
 0x211   :  { %v4045_v33 = vpop.f32.mrf.mxu1  ;;  %v2664_v40 = vpop.f32.mrf.mxu0 }
 0x213   :  { %v4047_v57 = vpop.f32.mrf.mxu1  ;;  %v4049_v17 = vpop.f32.mrf.mxu0 }
 0x215   :  { %v4051_v59 = vpop.f32.mrf.mxu1  ;;  %v2667_v14 = vpop.f32.mrf.mxu0 }
 0x216   :  { %v1792_v14 = vmax.f32 %v4000_v37, 0.0 }
 0x217   :  { %v4053_v53 = vpop.f32.mrf.mxu1  ;;  %v4055_v52 = vpop.f32.mrf.mxu0 }
 0x219   :  { %v4057_v4 = vpop.f32.mrf.mxu1  ;;  %v2668_v43 = vpop.f32.mrf.mxu0 }
 0x21b   :  { %v4059_v50 = vpop.f32.mrf.mxu1  ;;  %v4061_v36 = vpop.f32.mrf.mxu0 }
 0x21d   :  { %v4063_v44 = vpop.f32.mrf.mxu1  ;;  %v2671_v29 = vpop.f32.mrf.mxu0 }
 0x21f   :  { %v1553_v41 = vpop.f32.mrf.mxu1  ;;  %v4065_v61 = vpop.f32.mrf.mxu0 }
 0x220   :  { %v1934_v22 = vmax.f32 %v1553_v41, 0.0 }
 0x221   :  { %v1555_v3 = vpop.f32.mrf.mxu1  ;;  %v2672_v24 = vpop.f32.mrf.mxu0 }
 0x222   :  { %v2103_v47 = vmax.f32 %v1765_v39, %v1934_v22  ;;  %v1935_v55 = vmax.f32 %v1555_v3, 0.0  ;;  %v1780_v22 = vmax.f32 %v4007_v42, 0.0 }
 0x223   :  { %v1559_v32 = vpop.f32.mrf.mxu1  ;;  %v4069_v2 = vpop.f32.mrf.mxu0 }
 0x224   :  { %2272 = vst [vmem:[%s4227_s2 + $0x50] sm:$0xff] %v2103_v47  ;;  %v2104_v63 = vmax.f32 %v1766_v9, %v1935_v55  ;;  %v1947_v48 = vmax.f32 %v1559_v32, 0.0  ;;  %v1805_v55 = vmax.f32 %v4009_v5, 0.0 }
 0x225   :  { %v1561_v15 = vpop.f32.mrf.mxu1  ;;  %v2675_v35 = vpop.f32.mrf.mxu0 }
 0x226   :  { %2273 = vst [vmem:[%s4227_s2 + $0x58] sm:$0xff] %v2104_v63  ;;  %v2116_v18 = vmax.f32 %v1778_v45, %v1947_v48  ;;  %v1948_v62 = vmax.f32 %v1561_v15, 0.0  ;;  %v1817_v45 = vmax.f32 %v4011_v25, 0.0  ;;  %v1793_v15 = vmax.f32 %v4013_v6, 0.0 }
 0x227   :  { %v1563_v12 = vpop.f32.mrf.mxu1  ;;  %v1703_v51 = vpop.f32.mrf.mxu0 }
 0x228   :  { %2285 = vst [vmem:[%s4227_s2 + $0xb8] sm:$0xff] %v2116_v18  ;;  %v2117_v46 = vmax.f32 %v1779_v54, %v1948_v62  ;;  %v1960_v38 = vmax.f32 %v1563_v12, 0.0  ;;  %v1936_v30 = vmax.f32 %v1703_v51, 0.0  ;;  %v1830_v51 = vmax.f32 %v4017_v10, 0.0 }
 0x229   :  { %v1565_v31 = vpop.f32.mrf.mxu1  ;;  %v2676_v40 = vpop.f32.mrf.mxu0 }
 0x22a   :  { %2286 = vst [vmem:[%s4227_s2 + $0xc0] sm:$0xff] %v2117_v46  ;;  %v2129_v21 = vmax.f32 %v1791_v19, %v1960_v38  ;;  %v2105_v43 = vmax.f32 %v1767_v1, %v1936_v30  ;;  %v1961_v29 = vmax.f32 %v1565_v31, 0.0  ;;  %v1818_v19 = vmax.f32 %v4015_v26, 0.0 }
 0x22b   :  { %v1569_v41 = vpop.f32.mrf.mxu1  ;;  %v1708_v39 = vpop.f32.mrf.mxu0  ;;  %v1806_v38 = vmax.f32 %v4019_v28, 0.0 }
 0x22c   :  { %2298 = vst [vmem:[%s4227_s2 + $0x120] sm:$0xff] %v2129_v21  ;;  %2274 = vst [vmem:[%s4227_s2 + $0x60] sm:$0xff] %v2105_v43  ;;  %v2130_v37 = vmax.f32 %v1792_v14, %v1961_v29  ;;  %v1973_v3 = vmax.f32 %v1569_v41, 0.0  ;;  %v1949_v24 = vmax.f32 %v1708_v39, 0.0  ;;  %v1831_v21 = vmax.f32 %v4021_v34, 0.0 }
 0x22d   :  { %v1571_v9 = vpop.f32.mrf.mxu1  ;;  %v2679_v47 = vpop.f32.mrf.mxu0  ;;  %v1843_v29 = vmax.f32 %v4023_v13, 0.0  ;;  %v1819_v39 = vmax.f32 %v4025_v20, 0.0 }
 0x22e   :  { %2299 = vst [vmem:[%s4227_s2 + $0x128] sm:$0xff] %v2130_v37  ;;  %v2142_v8 = vmax.f32 %v1804_v49, %v1973_v3  ;;  %v2118_v42 = vmax.f32 %v1780_v22, %v1949_v24  ;;  %v1974_v32 = vmax.f32 %v1571_v9, 0.0  ;;  %v1844_v9 = vmax.f32 %v4027_v11, 0.0 }
 0x22f   :  { %v1573_v63 = vpop.f32.mrf.mxu1  ;;  %v1711_v48 = vpop.f32.mrf.mxu0 }
 0x230   :  { %2311 = vst [vmem:[%s4227_s2 + $0x188] sm:$0xff] %v2142_v8  ;;  %2287 = vst [vmem:[%s4227_s2 + $0xc8] sm:$0xff] %v2118_v42  ;;  %v2143_v5 = vmax.f32 %v1805_v55, %v1974_v32  ;;  %v1986_v35 = vmax.f32 %v1573_v63, 0.0  ;;  %v1962_v54 = vmax.f32 %v1711_v48, 0.0  ;;  %v1856_v55 = vmax.f32 %v4029_v58, 0.0 }
 0x231   :  { %v1575_v18 = vpop.f32.mrf.mxu1  ;;  %v2680_v62 = vpop.f32.mrf.mxu0  ;;  %v1832_v32 = vmax.f32 %v4031_v0, 0.0 }
 0x232   :  { %2312 = vst [vmem:[%s4227_s2 + $0x190] sm:$0xff] %v2143_v5  ;;  %v2155_v25 = vmax.f32 %v1817_v45, %v1986_v35  ;;  %v2131_v6 = vmax.f32 %v1793_v15, %v1962_v54  ;;  %v1987_v12 = vmax.f32 %v1575_v18, 0.0  ;;  %v1857_v5 = vmax.f32 %v4033_v56, 0.0 }
 0x233   :  { %v1579_v1 = vpop.f32.mrf.mxu1  ;;  %v1716_v46 = vpop.f32.mrf.mxu0  ;;  %v1869_v54 = vmax.f32 %v4035_v60, 0.0 }
 0x234   :  { %2324 = vst [vmem:[%s4227_s2 + $0x1f0] sm:$0xff] %v2155_v25  ;;  %2300 = vst [vmem:[%s4227_s2 + $0x130] sm:$0xff] %v2131_v6  ;;  %v2156_v26 = vmax.f32 %v1818_v19, %v1987_v12  ;;  %v1999_v30 = vmax.f32 %v1579_v1, 0.0  ;;  %v1975_v31 = vmax.f32 %v1716_v46, 0.0  ;;  %v1845_v19 = vmax.f32 %v4037_v7, 0.0 }
 0x235   :  { %v1581_v40 = vpop.f32.mrf.mxu1  ;;  %v2683_v14 = vpop.f32.mrf.mxu0  ;;  %v1870_v1 = vmax.f32 %v4039_v23, 0.0 }
 0x236   :  { %2325 = vst [vmem:[%s4227_s2 + $0x1f8] sm:$0xff] %v2156_v26  ;;  %v2168_v10 = vmax.f32 %v1830_v51, %v1999_v30  ;;  %v2144_v28 = vmax.f32 %v1806_v38, %v1975_v31  ;;  %v2000_v43 = vmax.f32 %v1581_v40, 0.0  ;;  %v1882_v38 = vmax.f32 %v4041_v27, 0.0 }
 0x237   :  { %v1583_v49 = vpop.f32.mrf.mxu1  ;;  %v1719_v41 = vpop.f32.mrf.mxu0  ;;  %v1858_v31 = vmax.f32 %v4043_v16, 0.0 }
 0x238   :  { %2337 = vst [vmem:[%s4227_s2 + $0x258] sm:$0xff] %v2168_v10  ;;  %2313 = vst [vmem:[%s4227_s2 + $0x198] sm:$0xff] %v2144_v28  ;;  %v2169_v34 = vmax.f32 %v1831_v21, %v2000_v43  ;;  %v2012_v22 = vmax.f32 %v1583_v49, 0.0  ;;  %v1988_v37 = vmax.f32 %v1719_v41, 0.0  ;;  %v1883_v28 = vmax.f32 %v4045_v33, 0.0 }
 0x239   :  { %v1585_v3 = vpop.f32.mrf.mxu1  ;;  %v2684_v24 = vpop.f32.mrf.mxu0 }
 0x23a   :  { %2338 = vst [vmem:[%s4227_s2 + $0x260] sm:$0xff] %v2169_v34  ;;  %v2181_v13 = vmax.f32 %v1843_v29, %v2012_v22  ;;  %v2157_v20 = vmax.f32 %v1819_v39, %v1988_v37  ;;  %v2013_v47 = vmax.f32 %v1585_v3, 0.0  ;;  %v1895_v29 = vmax.f32 %v4047_v57, 0.0 }
 0x23b   :  { %v1589_v8 = vpop.f32.mrf.mxu1  ;;  %v1724_v42 = vpop.f32.mrf.mxu0  ;;  %v1871_v39 = vmax.f32 %v4049_v17, 0.0  ;;  %v1896_v24 = vmax.f32 %v4051_v59, 0.0 }
 0x23c   :  { %2350 = vst [vmem:[%s4227_s2 + $0x2c0] sm:$0xff] %v2181_v13  ;;  %2326 = vst [vmem:[%s4227_s2 + $0x200] sm:$0xff] %v2157_v20  ;;  %v2182_v11 = vmax.f32 %v1844_v9, %v2013_v47  ;;  %v2025_v45 = vmax.f32 %v1589_v8, 0.0  ;;  %v2001_v63 = vmax.f32 %v1724_v42, 0.0  ;;  %v1908_v13 = vmax.f32 %v4053_v53, 0.0 }
 0x23d   :  { %v1591_v48 = vpop.f32.mrf.mxu1  ;;  %v2687_v15 = vpop.f32.mrf.mxu0 }
 0x23e   :  { %2351 = vst [vmem:[%s4227_s2 + $0x2c8] sm:$0xff] %v2182_v11  ;;  %v2194_v58 = vmax.f32 %v1856_v55, %v2025_v45  ;;  %v2170_v0 = vmax.f32 %v1832_v32, %v2001_v63  ;;  %v2026_v35 = vmax.f32 %v1591_v48, 0.0  ;;  %v1884_v55 = vmax.f32 %v4055_v52, 0.0 }
 0x23f   :  { %v1593_v18 = vpop.f32.mrf.mxu1  ;;  %v1727_v62 = vpop.f32.mrf.mxu0  ;;  %v1909_v45 = vmax.f32 %v4057_v4, 0.0  ;;  %v1921_v48 = vmax.f32 %v4059_v50, 0.0 }
 0x240   :  { %2363 = vst [vmem:[%s4227_s2 + $0x328] sm:$0xff] %v2194_v58  ;;  %2339 = vst [vmem:[%s4227_s2 + $0x268] sm:$0xff] %v2170_v0  ;;  %v2195_v56 = vmax.f32 %v1857_v5, %v2026_v35  ;;  %v2038_v25 = vmax.f32 %v1593_v18, 0.0  ;;  %v2014_v6 = vmax.f32 %v1727_v62, 0.0  ;;  %v1897_v58 = vmax.f32 %v4061_v36, 0.0 }
 0x241   :  { %v1595_v12 = vpop.f32.mrf.mxu1  ;;  %v2688_v51 = vpop.f32.mrf.mxu0  ;;  %v1922_v62 = vmax.f32 %v4063_v44, 0.0 }
 0x242   :  { %2364 = vst [vmem:[%s4227_s2 + $0x330] sm:$0xff] %v2195_v56  ;;  %v2207_v60 = vmax.f32 %v1869_v54, %v2038_v25  ;;  %v2183_v7 = vmax.f32 %v1845_v19, %v2014_v6  ;;  %v2039_v46 = vmax.f32 %v1595_v12, 0.0  ;;  %v1910_v25 = vmax.f32 %v4065_v61, 0.0 }
 0x243   :  { %v1599_v26 = vpop.f32.mrf.mxu1  ;;  %v1732_v30 = vpop.f32.mrf.mxu0 }
 0x244   :  { %2376 = vst [vmem:[%s4227_s2 + $0x390] sm:$0xff] %v2207_v60  ;;  %2352 = vst [vmem:[%s4227_s2 + $0x2d0] sm:$0xff] %v2183_v7  ;;  %v2208_v23 = vmax.f32 %v1870_v1, %v2039_v46  ;;  %v2051_v40 = vmax.f32 %v1599_v26, 0.0  ;;  %v2027_v14 = vmax.f32 %v1732_v30, 0.0  ;;  %v1923_v60 = vmax.f32 %v4069_v2, 0.0 }
 0x245   :  { %v1601_v21 = vpop.f32.mrf.mxu1  ;;  %v2691_v10 = vpop.f32.mrf.mxu0 }
 0x246   :  { %2377 = vst [vmem:[%s4227_s2 + $0x398] sm:$0xff] %v2208_v23  ;;  %v2220_v27 = vmax.f32 %v1882_v38, %v2051_v40  ;;  %v2196_v16 = vmax.f32 %v1858_v31, %v2027_v14  ;;  %v2052_v43 = vmax.f32 %v1601_v21, 0.0 }
 0x247   :  { %v1603_v49 = vpop.f32.mrf.mxu1  ;;  %v1735_v41 = vpop.f32.mrf.mxu0 }
 0x248   :  { %2389 = vst [vmem:[%s4227_s2 + $0x3f8] sm:$0xff] %v2220_v27  ;;  %2365 = vst [vmem:[%s4227_s2 + $0x338] sm:$0xff] %v2196_v16  ;;  %v2221_v33 = vmax.f32 %v1883_v28, %v2052_v43  ;;  %v2064_v34 = vmax.f32 %v1603_v49, 0.0  ;;  %v2040_v22 = vmax.f32 %v1735_v41, 0.0 }
 0x249   :  { %v1605_v37 = vpop.f32.mrf.mxu1  ;;  %v2692_v3 = vpop.f32.mrf.mxu0 }
 0x24a   :  { %2390 = vst [vmem:[%s4227_s2 + $0x400] sm:$0xff] %v2221_v33  ;;  %v2233_v57 = vmax.f32 %v1895_v29, %v2064_v34  ;;  %v2209_v17 = vmax.f32 %v1871_v39, %v2040_v22  ;;  %v2065_v9 = vmax.f32 %v1605_v37, 0.0 }
 0x24b   :  { %v1609_v20 = vpop.f32.mrf.mxu1  ;;  %v1740_v47 = vpop.f32.mrf.mxu0 }
 0x24c   :  { %2402 = vst [vmem:[%s4227_s2 + $0x460] sm:$0xff] %v2233_v57  ;;  %2378 = vst [vmem:[%s4227_s2 + $0x3a0] sm:$0xff] %v2209_v17  ;;  %v2234_v59 = vmax.f32 %v1896_v24, %v2065_v9  ;;  %v2077_v8 = vmax.f32 %v1609_v20, 0.0  ;;  %v2053_v42 = vmax.f32 %v1740_v47, 0.0 }
 0x24d   :  { %v1611_v32 = vpop.f32.mrf.mxu1  ;;  %v2695_v11 = vpop.f32.mrf.mxu0 }
 0x24e   :  { %2403 = vst [vmem:[%s4227_s2 + $0x468] sm:$0xff] %v2234_v59  ;;  %v2246_v53 = vmax.f32 %v1908_v13, %v2077_v8  ;;  %v2222_v52 = vmax.f32 %v1884_v55, %v2053_v42  ;;  %v2078_v63 = vmax.f32 %v1611_v32, 0.0 }
 0x24f   :  { %v1613_v15 = vpop.f32.mrf.mxu1  ;;  %v1743_v5 = vpop.f32.mrf.mxu0 }
 0x250   :  { %2415 = vst [vmem:[%s4227_s2 + $0x4c8] sm:$0xff] %v2246_v53  ;;  %2391 = vst [vmem:[%s4227_s2 + $0x408] sm:$0xff] %v2222_v52  ;;  %v2247_v4 = vmax.f32 %v1909_v45, %v2078_v63  ;;  %v2090_v0 = vmax.f32 %v1613_v15, 0.0  ;;  %v2066_v35 = vmax.f32 %v1743_v5, 0.0 }
 0x251   :  { %v1615_v54 = vpop.f32.mrf.mxu1  ;;  %v2696_v18 = vpop.f32.mrf.mxu0 }
 0x252   :  { %2416 = vst [vmem:[%s4227_s2 + $0x4d0] sm:$0xff] %v2247_v4  ;;  %v2259_v50 = vmax.f32 %v1921_v48, %v2090_v0  ;;  %v2235_v36 = vmax.f32 %v1897_v58, %v2066_v35  ;;  %v2091_v19 = vmax.f32 %v1615_v54, 0.0 }
 0x253   :  { %v1748_v56 = vpop.f32.mrf.mxu0 }
 0x254   :  { %2428 = vst [vmem:[%s4227_s2 + $0x530] sm:$0xff] %v2259_v50  ;;  %2404 = vst [vmem:[%s4227_s2 + $0x470] sm:$0xff] %v2235_v36  ;;  %v2260_v6 = vmax.f32 %v1922_v62, %v2091_v19  ;;  %v2079_v44 = vmax.f32 %v1748_v56, 0.0 }
 0x255   :  { %v2699_v12 = vpop.f32.mrf.mxu0 }
 0x256   :  { %2429 = vst [vmem:[%s4227_s2 + $0x538] sm:$0xff] %v2260_v6  ;;  %v2248_v51 = vmax.f32 %v1910_v25, %v2079_v44 }
 0x257   :  { %v1751_v1 = vpop.f32.mrf.mxu0 }
 0x258   :  { %2417 = vst [vmem:[%s4227_s2 + $0x4d8] sm:$0xff] %v2248_v51  ;;  %v2092_v61 = vmax.f32 %v1751_v1, 0.0 }
 0x259   :  { %v2700_v7 = vpop.f32.mrf.mxu0 }
 0x25a   :  { %v2261_v46 = vmax.f32 %v1923_v60, %v2092_v61 }
 0x25c   :  { %2430 = vst [vmem:[%s4227_s2 + $0x540] sm:$0xff] %v2261_v46 }
 0x25d   :  { %2435 = vsyncpa [#allocation3], 1 }

</bundles_post_ra>
